<compile_context>
chip_gen: v7x
topology: tpu7x:2x2x1
jax: 0.10.0
libtpu: 0.0.40
codegen_flags: <defaults>
</compile_context>

<pallas_src>
import functools

import jax
import jax.numpy as jnp
from jax.experimental import pallas as pl

_LANE = 128            # lane-dense padded width for the classifier logits
_LN_EPS = 1e-5         # RoBERTa layer_norm_eps
_MASK_BIAS = -1e9      # additive mask value.  NOTE: a fully-masked row would
                       # give a uniform softmax instead of zeros; RoBERTa
                       # inputs always attend to at least the CLS token, so
                       # this cannot trigger here.
_APPROX_SOFTMAX_RECIP = True   # EUP vrcp for the softmax denominator
                               # (~1e-3 relative error).  Set False for
                               # closer-to-reference numerics.


# -----------------------------------------------------------------------------
# In-kernel helpers
# -----------------------------------------------------------------------------
def _layernorm(x, g, b, eps=_LN_EPS):
    mean = jnp.mean(x, axis=-1, keepdims=True)
    var = jnp.mean((x - mean) ** 2, axis=-1, keepdims=True)
    return (x - mean) * jax.lax.rsqrt(var + eps) * g + b


def _gelu_exact(x):
    # Exact (erf-based) GELU as in HF RoBERTa.  erf is evaluated with the
    # Abramowitz-Stegun 7.1.26 rational approximation (|err| < 1.5e-7) so the
    # only transcendental needed inside Mosaic is exp (EUP slot).
    z = x * 0.7071067811865476
    az = jnp.abs(z)
    t = 1.0 / (1.0 + 0.3275911 * az)
    poly = t * (0.254829592 + t * (-0.284496736 + t * (1.421413741
               + t * (-1.453152027 + t * 1.061405429))))
    erf_abs = 1.0 - poly * jnp.exp(-az * az)
    erf = jnp.where(z >= 0.0, erf_abs, -erf_abs)
    return 0.5 * x * (1.0 + erf)


# -----------------------------------------------------------------------------
# Fused whole-model kernel.  Gridless: all operands are whole-array VMEM
# blocks, the layer loop is a static Python unroll, batch is folded into the
# token/row axis for every dense op.
# -----------------------------------------------------------------------------
def _codebert_kernel(x_ref, bias_ref, embln_ref, wqkv_ref, bqkv_ref, wo_ref,
                     vecs_ref, wi_ref, bi_ref, wo2_ref, clsw_ref, clsb_ref,
                     o_ref, *, num_heads, num_layers, batch, seq):
    T, H = x_ref.shape                         # T = batch * seq
    Dh = H // num_heads

    # Embedding LayerNorm (the embedding gathers + adds were done as XLA glue).
    embln = embln_ref[...]                     # (2, H)
    x = _layernorm(x_ref[...], embln[0:1, :], embln[1:2, :])          # (T, H)
    bias = bias_ref[...]                       # (T, T) cross-batch + pad mask

    for l in range(num_layers):                # static unroll; each weight read once
        vecs = vecs_ref[l]                     # (6, H)
        bo, ln1_g, ln1_b = vecs[0:1], vecs[1:2], vecs[2:3]
        bo2, ln2_g, ln2_b = vecs[3:4], vecs[4:5], vecs[5:6]
        wo = wo_ref[l]                         # (H, H)

        # ---- fused QKV projection over all B*S tokens (1/sqrt(Dh) folded
        # into the Q weights/bias at pack time) ----
        qkv = jnp.dot(x, wqkv_ref[l],
                      preferred_element_type=jnp.float32) + bqkv_ref[l]

        # ---- multi-head self-attention; the (T, T) bias makes the single
        # masked matmul per head equivalent to per-batch block-diagonal
        # attention, so no per-batch loop is needed ----
        attn = jnp.zeros((T, H), jnp.float32)
        for hd in range(num_heads):
            q = qkv[:, hd * Dh:(hd + 1) * Dh]
            k = qkv[:, H + hd * Dh:H + (hd + 1) * Dh]
            v = qkv[:, 2 * H + hd * Dh:2 * H + (hd + 1) * Dh]
            s = jax.lax.dot_general(q, k, (((1,), (1,)), ((), ())),
                                    preferred_element_type=jnp.float32) + bias
            m = jnp.max(s, axis=-1, keepdims=True)
            e = jnp.exp(s - m)
            denom = jnp.sum(e, axis=-1, keepdims=True)
            if _APPROX_SOFTMAX_RECIP:
                p = e * pl.reciprocal(denom, approx=True)
            else:
                p = e / denom
            ctx = jnp.dot(p, v, preferred_element_type=jnp.float32)    # (T, Dh)
            # Per-head output projection folded in (sublane-aligned row slice).
            attn = attn + jnp.dot(ctx, wo[hd * Dh:(hd + 1) * Dh, :],
                                  preferred_element_type=jnp.float32)
        attn = attn + bo

        h1 = _layernorm(attn + x, ln1_g, ln1_b)

        # ---- feed-forward: bias add + exact GELU fused into the matmul step ----
        inter = jnp.dot(h1, wi_ref[l],
                        preferred_element_type=jnp.float32) + bi_ref[l]
        inter = _gelu_exact(inter)
        ffn = jnp.dot(inter, wo2_ref[l],
                      preferred_element_type=jnp.float32) + bo2

        x = _layernorm(ffn + h1, ln2_g, ln2_b)

    # CLS pooling (token 0 of every sequence) + classifier head.  Output is
    # padded to 128 lanes so the store is lane-dense.  nn.Dropout(0.1) is
    # identity in eval mode.
    cls = jnp.concatenate([x[b * seq:b * seq + 1, :] for b in range(batch)],
                          axis=0)                                      # (B, H)
    logits = jnp.dot(cls, clsw_ref[...],
                     preferred_element_type=jnp.float32) + clsb_ref[...]
    o_ref[...] = logits


# -----------------------------------------------------------------------------
# Parameters: deterministic synthetic init in the raw RoBERTa layout, plus a
# packing step that produces the kernel-friendly stacked tensors.
# -----------------------------------------------------------------------------
def init_params(key, cfg):
    H, I, L = cfg["hidden"], cfg["intermediate"], cfg["layers"]
    V, P, NL = cfg["vocab"], cfg["max_pos"], cfg["num_labels"]
    std = 0.02
    keys = iter(jax.random.split(key, 8 + 10 * L))

    def normal(shape):
        return (std * jax.random.normal(next(keys), shape)).astype(jnp.float32)

    params = {
        "word_emb": normal((V, H)),
        "pos_emb": normal((P, H)),
        "type_emb": normal((1, H)),
        "emb_ln_g": jnp.ones((H,), jnp.float32),
        "emb_ln_b": jnp.zeros((H,), jnp.float32),
        "layers": [],
        "cls_w": normal((H, NL)),
        "cls_b": jnp.zeros((NL,), jnp.float32),
    }
    for _ in range(L):
        params["layers"].append({
            "wq": normal((H, H)), "bq": jnp.zeros((H,), jnp.float32),
            "wk": normal((H, H)), "bk": jnp.zeros((H,), jnp.float32),
            "wv": normal((H, H)), "bv": jnp.zeros((H,), jnp.float32),
            "wo": normal((H, H)), "bo": jnp.zeros((H,), jnp.float32),
            "ln1_g": jnp.ones((H,), jnp.float32), "ln1_b": jnp.zeros((H,), jnp.float32),
            "wi": normal((H, I)), "bi": jnp.zeros((I,), jnp.float32),
            "wo2": normal((I, H)), "bo2": jnp.zeros((H,), jnp.float32),
            "ln2_g": jnp.ones((H,), jnp.float32), "ln2_b": jnp.zeros((H,), jnp.float32),
        })
    return params


def pack_params(params, cfg):
    # NOTE: weights stay f32 here because the toy config fits trivially in
    # VMEM.  For real CodeBERT sizes (H=768, I=3072) cast the streamed weights
    # to bf16 (f32 accumulation via preferred_element_type) and switch back to
    # a grid=(L,) streamed-BlockSpec design with vmem_limit_bytes set.
    H, NH = cfg["hidden"], cfg["heads"]
    Dh = H // NH
    scale = 1.0 / (Dh ** 0.5)
    NL = cfg["num_labels"]

    wqkv, bqkv, wo, vecs, wi, bi, wo2 = [], [], [], [], [], [], []
    for lyr in params["layers"]:
        wqkv.append(jnp.concatenate([lyr["wq"] * scale, lyr["wk"], lyr["wv"]], axis=1))
        bqkv.append(jnp.concatenate([lyr["bq"] * scale, lyr["bk"], lyr["bv"]])[None, :])
        wo.append(lyr["wo"])
        vecs.append(jnp.stack([lyr["bo"], lyr["ln1_g"], lyr["ln1_b"],
                               lyr["bo2"], lyr["ln2_g"], lyr["ln2_b"]], axis=0))
        wi.append(lyr["wi"])
        bi.append(lyr["bi"][None, :])
        wo2.append(lyr["wo2"])

    cls_w_pad = jnp.zeros((H, _LANE), jnp.float32).at[:, :NL].set(params["cls_w"])
    cls_b_pad = jnp.zeros((1, _LANE), jnp.float32).at[:, :NL].set(params["cls_b"])

    return {
        "word_emb": params["word_emb"],
        "pos_emb": params["pos_emb"],
        "type_emb": params["type_emb"],
        "embln": jnp.stack([params["emb_ln_g"], params["emb_ln_b"]], axis=0),  # (2, H)
        "wqkv": jnp.stack(wqkv),     # (L, H, 3H)   (scale folded into Q)
        "bqkv": jnp.stack(bqkv),     # (L, 1, 3H)
        "wo": jnp.stack(wo),         # (L, H, H)
        "vecs": jnp.stack(vecs),     # (L, 6, H)    [bo, ln1_g, ln1_b, bo2, ln2_g, ln2_b]
        "wi": jnp.stack(wi),         # (L, H, I)
        "bi": jnp.stack(bi),         # (L, 1, I)
        "wo2": jnp.stack(wo2),       # (L, I, H)
        "cls_w_pad": cls_w_pad,      # (H, 128) lane-dense classifier
        "cls_b_pad": cls_b_pad,      # (1, 128)
    }


# -----------------------------------------------------------------------------
# Forward pass: embedding gathers in XLA glue, everything else in ONE kernel.
# -----------------------------------------------------------------------------
def codebert_classifier_forward(packed, input_ids, attention_mask, cfg):
    B, S = input_ids.shape
    H, NH, L = cfg["hidden"], cfg["heads"], cfg["layers"]
    NL = cfg["num_labels"]
    pad_id = cfg["pad_token_id"]
    T = B * S

    # RoBERTa embeddings (gathers / position ids stay as XLA glue).
    not_pad = (input_ids != pad_id).astype(jnp.int32)
    position_ids = jnp.cumsum(not_pad, axis=1) * not_pad + pad_id
    emb = (packed["word_emb"][input_ids]
           + packed["pos_emb"][position_ids]
           + packed["type_emb"][0][None, None, :]).astype(jnp.float32)   # (B, S, H)
    emb_flat = emb.reshape(T, H)                                         # batch folded

    # Combined (T, T) additive attention bias: _MASK_BIAS for cross-batch
    # pairs and for padded keys, 0 otherwise.  Lets the kernel run
    # batch-folded attention with a single masked matmul per head.
    batch_ids = jnp.repeat(jnp.arange(B, dtype=jnp.int32), S)            # (T,)
    key_valid = attention_mask.reshape(T).astype(bool)
    valid = (batch_ids[:, None] == batch_ids[None, :]) & key_valid[None, :]
    bias_tt = jnp.where(valid, 0.0, _MASK_BIAS).astype(jnp.float32)      # (T, T)

    kernel = functools.partial(_codebert_kernel, num_heads=NH, num_layers=L,
                               batch=B, seq=S)
    # Gridless pallas_call: every operand is a whole-array VMEM-resident
    # block (no per-step pipelining / double-buffering — ~90 KB total).
    logits_padded = pl.pallas_call(
        kernel,
        out_shape=jax.ShapeDtypeStruct((B, _LANE), jnp.float32),
    )(emb_flat, bias_tt, packed["embln"], packed["wqkv"], packed["bqkv"],
      packed["wo"], packed["vecs"], packed["wi"], packed["bi"], packed["wo2"],
      packed["cls_w_pad"], packed["cls_b_pad"])

    # TODO(synk): training-mode dropout not implemented (inference semantics only).
    return logits_padded[:, :NL]


# -----------------------------------------------------------------------------
# Pure-JAX reference for a correctness check.
# -----------------------------------------------------------------------------
def reference_forward(params, input_ids, attention_mask, cfg):
    B, S = input_ids.shape
    H, NH = cfg["hidden"], cfg["heads"]
    Dh = H // NH
    pad_id = cfg["pad_token_id"]
    hp = jax.lax.Precision.HIGHEST

    def ln(h, g, b, eps=_LN_EPS):
        mu = jnp.mean(h, -1, keepdims=True)
        var = jnp.mean((h - mu) ** 2, -1, keepdims=True)
        return (h - mu) * jax.lax.rsqrt(var + eps) * g + b

    not_pad = (input_ids != pad_id).astype(jnp.int32)
    position_ids = jnp.cumsum(not_pad, axis=1) * not_pad + pad_id
    x = (params["word_emb"][input_ids] + params["pos_emb"][position_ids]
         + params["type_emb"][0][None, None, :]).astype(jnp.float32)
    x = ln(x, params["emb_ln_g"], params["emb_ln_b"])

    bias = (1.0 - attention_mask.astype(jnp.float32))[:, None, None, :] * -1e9
    scale = 1.0 / (Dh ** 0.5)

    for lyr in params["layers"]:
        q = jnp.einsum("bsh,hd->bsd", x, lyr["wq"], precision=hp) + lyr["bq"]
        k = jnp.einsum("bsh,hd->bsd", x, lyr["wk"], precision=hp) + lyr["bk"]
        v = jnp.einsum("bsh,hd->bsd", x, lyr["wv"], precision=hp) + lyr["bv"]
        q = q.reshape(B, S, NH, Dh).transpose(0, 2, 1, 3)
        k = k.reshape(B, S, NH, Dh).transpose(0, 2, 1, 3)
        v = v.reshape(B, S, NH, Dh).transpose(0, 2, 1, 3)
        s = jnp.einsum("bhqd,bhkd->bhqk", q, k, precision=hp) * scale + bias
        p = jax.nn.softmax(s, axis=-1)
        ctx = jnp.einsum("bhqk,bhkd->bhqd", p, v, precision=hp)
        ctx = ctx.transpose(0, 2, 1, 3).reshape(B, S, H)
        attn = jnp.einsum("bsh,hd->bsd", ctx, lyr["wo"], precision=hp) + lyr["bo"]
        x = ln(attn + x, lyr["ln1_g"], lyr["ln1_b"])
        inter = jax.nn.gelu(
            jnp.einsum("bsh,hi->bsi", x, lyr["wi"], precision=hp) + lyr["bi"],
            approximate=False)
        ffn = jnp.einsum("bsi,ih->bsh", inter, lyr["wo2"], precision=hp) + lyr["bo2"]
        x = ln(ffn + x, lyr["ln2_g"], lyr["ln2_b"])

    pooled = x[:, 0, :]
    return jnp.dot(pooled, params["cls_w"], precision=hp) + params["cls_b"]


# -----------------------------------------------------------------------------
if __name__ == "__main__":
    cfg = dict(vocab=64, hidden=32, heads=4, intermediate=64, layers=2,
               max_pos=16, num_labels=2, pad_token_id=1)
    B, S = 2, 8

    key = jax.random.PRNGKey(0)
    pkey, ikey = jax.random.split(key)
    params = init_params(pkey, cfg)
    packed = pack_params(params, cfg)

    input_ids = jax.random.randint(ikey, (B, S), 3, cfg["vocab"], dtype=jnp.int32)
    attention_mask = jnp.ones((B, S), jnp.int32)
    # second sequence has two padding tokens at the tail
    attention_mask = attention_mask.at[1, 6:].set(0)
    input_ids = input_ids.at[1, 6:].set(cfg["pad_token_id"])

    fwd = jax.jit(functools.partial(codebert_classifier_forward, cfg=cfg))
    logits = jax.block_until_ready(fwd(packed, input_ids, attention_mask))

    assert logits.shape == (B, cfg["num_labels"])
    assert bool(jnp.all(jnp.isfinite(logits)))

    ref = reference_forward(params, input_ids, attention_mask, cfg)
    assert bool(jnp.allclose(logits, ref, atol=2e-2, rtol=2e-2)), (logits, ref)

    print("KERNEL_OK")
</pallas_src>

<mosaic_0001>
module attributes {stable_mosaic.version = 11 : i64} {
  func.func @_codebert_kernel(%arg0: memref<16x32xf32, #tpu.memory_space<vmem>>, %arg1: memref<16x16xf32, #tpu.memory_space<vmem>>, %arg2: memref<2x32xf32, #tpu.memory_space<vmem>>, %arg3: memref<2x32x96xf32, #tpu.memory_space<vmem>>, %arg4: memref<2x1x96xf32, #tpu.memory_space<vmem>>, %arg5: memref<2x32x32xf32, #tpu.memory_space<vmem>>, %arg6: memref<2x6x32xf32, #tpu.memory_space<vmem>>, %arg7: memref<2x32x64xf32, #tpu.memory_space<vmem>>, %arg8: memref<2x1x64xf32, #tpu.memory_space<vmem>>, %arg9: memref<2x64x32xf32, #tpu.memory_space<vmem>>, %arg10: memref<32x128xf32, #tpu.memory_space<vmem>>, %arg11: memref<1x128xf32, #tpu.memory_space<vmem>>, %arg12: memref<2x128xf32, #tpu.memory_space<vmem>>) attributes {dimension_semantics = [], scalar_prefetch = 0 : i64, scratch_operands = 0 : i64, tpu.core_type = #tpu.core_type<tc>} {
    %c0 = arith.constant 0 : index
    %c0_0 = arith.constant 0 : index
    %0 = vector.load %arg2[%c0, %c0_0] : memref<2x32xf32, #tpu.memory_space<vmem>>, vector<2x32xf32>
    %c0_1 = arith.constant 0 : index
    %c0_2 = arith.constant 0 : index
    %1 = vector.load %arg0[%c0_1, %c0_2] : memref<16x32xf32, #tpu.memory_space<vmem>>, vector<16x32xf32>
    %2 = vector.extract_strided_slice %0 {offsets = [0, 0], sizes = [1, 32], strides = [1, 1]} : vector<2x32xf32> to vector<1x32xf32>
    %3 = vector.extract_strided_slice %0 {offsets = [1, 0], sizes = [1, 32], strides = [1, 1]} : vector<2x32xf32> to vector<1x32xf32>
    %cst = arith.constant dense<0.000000e+00> : vector<16xf32>
    %4 = vector.multi_reduction <add>, %1, %cst [1] : vector<16x32xf32> to vector<16xf32>
    %5 = vector.shape_cast %4 : vector<16xf32> to vector<16x1xf32>
    %cst_3 = arith.constant 3.200000e+01 : f32
    %6 = vector.broadcast %cst_3 : f32 to vector<16x1xf32>
    %7 = arith.divf %5, %6 : vector<16x1xf32>
    %8 = vector.broadcast %7 : vector<16x1xf32> to vector<16x32xf32>
    %9 = arith.subf %1, %8 : vector<16x32xf32>
    %10 = arith.mulf %9, %9 : vector<16x32xf32>
    %cst_4 = arith.constant dense<0.000000e+00> : vector<16xf32>
    %11 = vector.multi_reduction <add>, %10, %cst_4 [1] : vector<16x32xf32> to vector<16xf32>
    %12 = vector.shape_cast %11 : vector<16xf32> to vector<16x1xf32>
    %cst_5 = arith.constant 3.200000e+01 : f32
    %13 = vector.broadcast %cst_5 : f32 to vector<16x1xf32>
    %14 = arith.divf %12, %13 : vector<16x1xf32>
    %15 = vector.broadcast %7 : vector<16x1xf32> to vector<16x32xf32>
    %16 = arith.subf %1, %15 : vector<16x32xf32>
    %cst_6 = arith.constant 9.99999974E-6 : f32
    %17 = vector.broadcast %cst_6 : f32 to vector<16x1xf32>
    %18 = arith.addf %14, %17 : vector<16x1xf32>
    %19 = math.rsqrt %18 : vector<16x1xf32>
    %20 = vector.broadcast %19 : vector<16x1xf32> to vector<16x32xf32>
    %21 = arith.mulf %16, %20 : vector<16x32xf32>
    %22 = vector.broadcast %2 : vector<1x32xf32> to vector<16x32xf32>
    %23 = arith.mulf %21, %22 : vector<16x32xf32>
    %24 = vector.broadcast %3 : vector<1x32xf32> to vector<16x32xf32>
    %25 = arith.addf %23, %24 : vector<16x32xf32>
    %c0_7 = arith.constant 0 : index
    %c0_8 = arith.constant 0 : index
    %26 = vector.load %arg1[%c0_7, %c0_8] : memref<16x16xf32, #tpu.memory_space<vmem>>, vector<16x16xf32>
    %c0_9 = arith.constant 0 : index
    %c0_10 = arith.constant 0 : index
    %c0_11 = arith.constant 0 : index
    %27 = vector.load %arg6[%c0_9, %c0_10, %c0_11] : memref<2x6x32xf32, #tpu.memory_space<vmem>>, vector<1x6x32xf32>
    %28 = vector.shape_cast %27 : vector<1x6x32xf32> to vector<6x32xf32>
    %29 = vector.extract_strided_slice %28 {offsets = [0, 0], sizes = [1, 32], strides = [1, 1]} : vector<6x32xf32> to vector<1x32xf32>
    %30 = vector.extract_strided_slice %28 {offsets = [1, 0], sizes = [1, 32], strides = [1, 1]} : vector<6x32xf32> to vector<1x32xf32>
    %31 = vector.extract_strided_slice %28 {offsets = [2, 0], sizes = [1, 32], strides = [1, 1]} : vector<6x32xf32> to vector<1x32xf32>
    %32 = vector.extract_strided_slice %28 {offsets = [3, 0], sizes = [1, 32], strides = [1, 1]} : vector<6x32xf32> to vector<1x32xf32>
    %33 = vector.extract_strided_slice %28 {offsets = [4, 0], sizes = [1, 32], strides = [1, 1]} : vector<6x32xf32> to vector<1x32xf32>
    %34 = vector.extract_strided_slice %28 {offsets = [5, 0], sizes = [1, 32], strides = [1, 1]} : vector<6x32xf32> to vector<1x32xf32>
    %c0_12 = arith.constant 0 : index
    %c0_13 = arith.constant 0 : index
    %c0_14 = arith.constant 0 : index
    %35 = vector.load %arg5[%c0_12, %c0_13, %c0_14] : memref<2x32x32xf32, #tpu.memory_space<vmem>>, vector<1x32x32xf32>
    %36 = vector.shape_cast %35 : vector<1x32x32xf32> to vector<32x32xf32>
    %c0_15 = arith.constant 0 : index
    %c0_16 = arith.constant 0 : index
    %c0_17 = arith.constant 0 : index
    %37 = vector.load %arg3[%c0_15, %c0_16, %c0_17] : memref<2x32x96xf32, #tpu.memory_space<vmem>>, vector<1x32x96xf32>
    %38 = vector.shape_cast %37 : vector<1x32x96xf32> to vector<32x96xf32>
    %cst_18 = arith.constant dense<0.000000e+00> : vector<16x96xf32>
    %39 = tpu.matmul %25, %38, %cst_18 {dimension_numbers = #tpu.dot_dimension_numbers<[1], [0], [0], [1], [0, 0, 1, 1], [], []>} : vector<16x32xf32>, vector<32x96xf32>, vector<16x96xf32> -> vector<16x96xf32>
    %c0_19 = arith.constant 0 : index
    %c0_20 = arith.constant 0 : index
    %c0_21 = arith.constant 0 : index
    %40 = vector.load %arg4[%c0_19, %c0_20, %c0_21] : memref<2x1x96xf32, #tpu.memory_space<vmem>>, vector<1x1x96xf32>
    %41 = vector.shape_cast %40 : vector<1x1x96xf32> to vector<1x96xf32>
    %42 = vector.broadcast %41 : vector<1x96xf32> to vector<16x96xf32>
    %43 = arith.addf %39, %42 : vector<16x96xf32>
    %cst_22 = arith.constant 0.000000e+00 : f32
    %44 = vector.broadcast %cst_22 : f32 to vector<16x32xf32>
    %45 = vector.extract_strided_slice %43 {offsets = [0, 0], sizes = [16, 8], strides = [1, 1]} : vector<16x96xf32> to vector<16x8xf32>
    %46 = vector.extract_strided_slice %43 {offsets = [0, 32], sizes = [16, 8], strides = [1, 1]} : vector<16x96xf32> to vector<16x8xf32>
    %47 = vector.extract_strided_slice %43 {offsets = [0, 64], sizes = [16, 8], strides = [1, 1]} : vector<16x96xf32> to vector<16x8xf32>
    %cst_23 = arith.constant dense<0.000000e+00> : vector<16x16xf32>
    %48 = tpu.matmul %45, %46, %cst_23 {dimension_numbers = #tpu.dot_dimension_numbers<[1], [1], [0], [0], [0, 0, 1, 0], [], []>} : vector<16x8xf32>, vector<16x8xf32>, vector<16x16xf32> -> vector<16x16xf32>
    %49 = arith.addf %48, %26 : vector<16x16xf32>
    %cst_24 = arith.constant dense<0xFF800000> : vector<16xf32>
    %50 = vector.multi_reduction <maximumf>, %49, %cst_24 [1] : vector<16x16xf32> to vector<16xf32>
    %51 = vector.shape_cast %50 : vector<16xf32> to vector<16x1xf32>
    %52 = vector.broadcast %51 : vector<16x1xf32> to vector<16x16xf32>
    %53 = arith.subf %49, %52 : vector<16x16xf32>
    %54 = math.exp %53 : vector<16x16xf32>
    %cst_25 = arith.constant dense<0.000000e+00> : vector<16xf32>
    %55 = vector.multi_reduction <add>, %54, %cst_25 [1] : vector<16x16xf32> to vector<16xf32>
    %56 = vector.shape_cast %55 : vector<16xf32> to vector<16x1xf32>
    %57 = tpu.reciprocal %56 {approx = true} : vector<16x1xf32> -> vector<16x1xf32>
    %58 = vector.broadcast %57 : vector<16x1xf32> to vector<16x16xf32>
    %59 = arith.mulf %54, %58 : vector<16x16xf32>
    %cst_26 = arith.constant dense<0.000000e+00> : vector<16x8xf32>
    %60 = tpu.matmul %59, %47, %cst_26 {dimension_numbers = #tpu.dot_dimension_numbers<[1], [0], [0], [1], [0, 0, 1, 1], [], []>} : vector<16x16xf32>, vector<16x8xf32>, vector<16x8xf32> -> vector<16x8xf32>
    %61 = vector.extract_strided_slice %36 {offsets = [0, 0], sizes = [8, 32], strides = [1, 1]} : vector<32x32xf32> to vector<8x32xf32>
    %cst_27 = arith.constant dense<0.000000e+00> : vector<16x32xf32>
    %62 = tpu.matmul %60, %61, %cst_27 {dimension_numbers = #tpu.dot_dimension_numbers<[1], [0], [0], [1], [0, 0, 1, 1], [], []>} : vector<16x8xf32>, vector<8x32xf32>, vector<16x32xf32> -> vector<16x32xf32>
    %63 = arith.addf %44, %62 : vector<16x32xf32>
    %64 = vector.extract_strided_slice %43 {offsets = [0, 8], sizes = [16, 8], strides = [1, 1]} : vector<16x96xf32> to vector<16x8xf32>
    %65 = vector.extract_strided_slice %43 {offsets = [0, 40], sizes = [16, 8], strides = [1, 1]} : vector<16x96xf32> to vector<16x8xf32>
    %66 = vector.extract_strided_slice %43 {offsets = [0, 72], sizes = [16, 8], strides = [1, 1]} : vector<16x96xf32> to vector<16x8xf32>
    %cst_28 = arith.constant dense<0.000000e+00> : vector<16x16xf32>
    %67 = tpu.matmul %64, %65, %cst_28 {dimension_numbers = #tpu.dot_dimension_numbers<[1], [1], [0], [0], [0, 0, 1, 0], [], []>} : vector<16x8xf32>, vector<16x8xf32>, vector<16x16xf32> -> vector<16x16xf32>
    %68 = arith.addf %67, %26 : vector<16x16xf32>
    %cst_29 = arith.constant dense<0xFF800000> : vector<16xf32>
    %69 = vector.multi_reduction <maximumf>, %68, %cst_29 [1] : vector<16x16xf32> to vector<16xf32>
    %70 = vector.shape_cast %69 : vector<16xf32> to vector<16x1xf32>
    %71 = vector.broadcast %70 : vector<16x1xf32> to vector<16x16xf32>
    %72 = arith.subf %68, %71 : vector<16x16xf32>
    %73 = math.exp %72 : vector<16x16xf32>
    %cst_30 = arith.constant dense<0.000000e+00> : vector<16xf32>
    %74 = vector.multi_reduction <add>, %73, %cst_30 [1] : vector<16x16xf32> to vector<16xf32>
    %75 = vector.shape_cast %74 : vector<16xf32> to vector<16x1xf32>
    %76 = tpu.reciprocal %75 {approx = true} : vector<16x1xf32> -> vector<16x1xf32>
    %77 = vector.broadcast %76 : vector<16x1xf32> to vector<16x16xf32>
    %78 = arith.mulf %73, %77 : vector<16x16xf32>
    %cst_31 = arith.constant dense<0.000000e+00> : vector<16x8xf32>
    %79 = tpu.matmul %78, %66, %cst_31 {dimension_numbers = #tpu.dot_dimension_numbers<[1], [0], [0], [1], [0, 0, 1, 1], [], []>} : vector<16x16xf32>, vector<16x8xf32>, vector<16x8xf32> -> vector<16x8xf32>
    %80 = vector.extract_strided_slice %36 {offsets = [8, 0], sizes = [8, 32], strides = [1, 1]} : vector<32x32xf32> to vector<8x32xf32>
    %cst_32 = arith.constant dense<0.000000e+00> : vector<16x32xf32>
    %81 = tpu.matmul %79, %80, %cst_32 {dimension_numbers = #tpu.dot_dimension_numbers<[1], [0], [0], [1], [0, 0, 1, 1], [], []>} : vector<16x8xf32>, vector<8x32xf32>, vector<16x32xf32> -> vector<16x32xf32>
    %82 = arith.addf %63, %81 : vector<16x32xf32>
    %83 = vector.extract_strided_slice %43 {offsets = [0, 16], sizes = [16, 8], strides = [1, 1]} : vector<16x96xf32> to vector<16x8xf32>
    %84 = vector.extract_strided_slice %43 {offsets = [0, 48], sizes = [16, 8], strides = [1, 1]} : vector<16x96xf32> to vector<16x8xf32>
    %85 = vector.extract_strided_slice %43 {offsets = [0, 80], sizes = [16, 8], strides = [1, 1]} : vector<16x96xf32> to vector<16x8xf32>
    %cst_33 = arith.constant dense<0.000000e+00> : vector<16x16xf32>
    %86 = tpu.matmul %83, %84, %cst_33 {dimension_numbers = #tpu.dot_dimension_numbers<[1], [1], [0], [0], [0, 0, 1, 0], [], []>} : vector<16x8xf32>, vector<16x8xf32>, vector<16x16xf32> -> vector<16x16xf32>
    %87 = arith.addf %86, %26 : vector<16x16xf32>
    %cst_34 = arith.constant dense<0xFF800000> : vector<16xf32>
    %88 = vector.multi_reduction <maximumf>, %87, %cst_34 [1] : vector<16x16xf32> to vector<16xf32>
    %89 = vector.shape_cast %88 : vector<16xf32> to vector<16x1xf32>
    %90 = vector.broadcast %89 : vector<16x1xf32> to vector<16x16xf32>
    %91 = arith.subf %87, %90 : vector<16x16xf32>
    %92 = math.exp %91 : vector<16x16xf32>
    %cst_35 = arith.constant dense<0.000000e+00> : vector<16xf32>
    %93 = vector.multi_reduction <add>, %92, %cst_35 [1] : vector<16x16xf32> to vector<16xf32>
    %94 = vector.shape_cast %93 : vector<16xf32> to vector<16x1xf32>
    %95 = tpu.reciprocal %94 {approx = true} : vector<16x1xf32> -> vector<16x1xf32>
    %96 = vector.broadcast %95 : vector<16x1xf32> to vector<16x16xf32>
    %97 = arith.mulf %92, %96 : vector<16x16xf32>
    %cst_36 = arith.constant dense<0.000000e+00> : vector<16x8xf32>
    %98 = tpu.matmul %97, %85, %cst_36 {dimension_numbers = #tpu.dot_dimension_numbers<[1], [0], [0], [1], [0, 0, 1, 1], [], []>} : vector<16x16xf32>, vector<16x8xf32>, vector<16x8xf32> -> vector<16x8xf32>
    %99 = vector.extract_strided_slice %36 {offsets = [16, 0], sizes = [8, 32], strides = [1, 1]} : vector<32x32xf32> to vector<8x32xf32>
    %cst_37 = arith.constant dense<0.000000e+00> : vector<16x32xf32>
    %100 = tpu.matmul %98, %99, %cst_37 {dimension_numbers = #tpu.dot_dimension_numbers<[1], [0], [0], [1], [0, 0, 1, 1], [], []>} : vector<16x8xf32>, vector<8x32xf32>, vector<16x32xf32> -> vector<16x32xf32>
    %101 = arith.addf %82, %100 : vector<16x32xf32>
    %102 = vector.extract_strided_slice %43 {offsets = [0, 24], sizes = [16, 8], strides = [1, 1]} : vector<16x96xf32> to vector<16x8xf32>
    %103 = vector.extract_strided_slice %43 {offsets = [0, 56], sizes = [16, 8], strides = [1, 1]} : vector<16x96xf32> to vector<16x8xf32>
    %104 = vector.extract_strided_slice %43 {offsets = [0, 88], sizes = [16, 8], strides = [1, 1]} : vector<16x96xf32> to vector<16x8xf32>
    %cst_38 = arith.constant dense<0.000000e+00> : vector<16x16xf32>
    %105 = tpu.matmul %102, %103, %cst_38 {dimension_numbers = #tpu.dot_dimension_numbers<[1], [1], [0], [0], [0, 0, 1, 0], [], []>} : vector<16x8xf32>, vector<16x8xf32>, vector<16x16xf32> -> vector<16x16xf32>
    %106 = arith.addf %105, %26 : vector<16x16xf32>
    %cst_39 = arith.constant dense<0xFF800000> : vector<16xf32>
    %107 = vector.multi_reduction <maximumf>, %106, %cst_39 [1] : vector<16x16xf32> to vector<16xf32>
    %108 = vector.shape_cast %107 : vector<16xf32> to vector<16x1xf32>
    %109 = vector.broadcast %108 : vector<16x1xf32> to vector<16x16xf32>
    %110 = arith.subf %106, %109 : vector<16x16xf32>
    %111 = math.exp %110 : vector<16x16xf32>
    %cst_40 = arith.constant dense<0.000000e+00> : vector<16xf32>
    %112 = vector.multi_reduction <add>, %111, %cst_40 [1] : vector<16x16xf32> to vector<16xf32>
    %113 = vector.shape_cast %112 : vector<16xf32> to vector<16x1xf32>
    %114 = tpu.reciprocal %113 {approx = true} : vector<16x1xf32> -> vector<16x1xf32>
    %115 = vector.broadcast %114 : vector<16x1xf32> to vector<16x16xf32>
    %116 = arith.mulf %111, %115 : vector<16x16xf32>
    %cst_41 = arith.constant dense<0.000000e+00> : vector<16x8xf32>
    %117 = tpu.matmul %116, %104, %cst_41 {dimension_numbers = #tpu.dot_dimension_numbers<[1], [0], [0], [1], [0, 0, 1, 1], [], []>} : vector<16x16xf32>, vector<16x8xf32>, vector<16x8xf32> -> vector<16x8xf32>
    %118 = vector.extract_strided_slice %36 {offsets = [24, 0], sizes = [8, 32], strides = [1, 1]} : vector<32x32xf32> to vector<8x32xf32>
    %cst_42 = arith.constant dense<0.000000e+00> : vector<16x32xf32>
    %119 = tpu.matmul %117, %118, %cst_42 {dimension_numbers = #tpu.dot_dimension_numbers<[1], [0], [0], [1], [0, 0, 1, 1], [], []>} : vector<16x8xf32>, vector<8x32xf32>, vector<16x32xf32> -> vector<16x32xf32>
    %120 = arith.addf %101, %119 : vector<16x32xf32>
    %121 = vector.broadcast %29 : vector<1x32xf32> to vector<16x32xf32>
    %122 = arith.addf %120, %121 : vector<16x32xf32>
    %123 = arith.addf %122, %25 : vector<16x32xf32>
    %cst_43 = arith.constant dense<0.000000e+00> : vector<16xf32>
    %124 = vector.multi_reduction <add>, %123, %cst_43 [1] : vector<16x32xf32> to vector<16xf32>
    %125 = vector.shape_cast %124 : vector<16xf32> to vector<16x1xf32>
    %cst_44 = arith.constant 3.200000e+01 : f32
    %126 = vector.broadcast %cst_44 : f32 to vector<16x1xf32>
    %127 = arith.divf %125, %126 : vector<16x1xf32>
    %128 = vector.broadcast %127 : vector<16x1xf32> to vector<16x32xf32>
    %129 = arith.subf %123, %128 : vector<16x32xf32>
    %130 = arith.mulf %129, %129 : vector<16x32xf32>
    %cst_45 = arith.constant dense<0.000000e+00> : vector<16xf32>
    %131 = vector.multi_reduction <add>, %130, %cst_45 [1] : vector<16x32xf32> to vector<16xf32>
    %132 = vector.shape_cast %131 : vector<16xf32> to vector<16x1xf32>
    %cst_46 = arith.constant 3.200000e+01 : f32
    %133 = vector.broadcast %cst_46 : f32 to vector<16x1xf32>
    %134 = arith.divf %132, %133 : vector<16x1xf32>
    %135 = vector.broadcast %127 : vector<16x1xf32> to vector<16x32xf32>
    %136 = arith.subf %123, %135 : vector<16x32xf32>
    %cst_47 = arith.constant 9.99999974E-6 : f32
    %137 = vector.broadcast %cst_47 : f32 to vector<16x1xf32>
    %138 = arith.addf %134, %137 : vector<16x1xf32>
    %139 = math.rsqrt %138 : vector<16x1xf32>
    %140 = vector.broadcast %139 : vector<16x1xf32> to vector<16x32xf32>
    %141 = arith.mulf %136, %140 : vector<16x32xf32>
    %142 = vector.broadcast %30 : vector<1x32xf32> to vector<16x32xf32>
    %143 = arith.mulf %141, %142 : vector<16x32xf32>
    %144 = vector.broadcast %31 : vector<1x32xf32> to vector<16x32xf32>
    %145 = arith.addf %143, %144 : vector<16x32xf32>
    %c0_48 = arith.constant 0 : index
    %c0_49 = arith.constant 0 : index
    %c0_50 = arith.constant 0 : index
    %146 = vector.load %arg7[%c0_48, %c0_49, %c0_50] : memref<2x32x64xf32, #tpu.memory_space<vmem>>, vector<1x32x64xf32>
    %147 = vector.shape_cast %146 : vector<1x32x64xf32> to vector<32x64xf32>
    %cst_51 = arith.constant dense<0.000000e+00> : vector<16x64xf32>
    %148 = tpu.matmul %145, %147, %cst_51 {dimension_numbers = #tpu.dot_dimension_numbers<[1], [0], [0], [1], [0, 0, 1, 1], [], []>} : vector<16x32xf32>, vector<32x64xf32>, vector<16x64xf32> -> vector<16x64xf32>
    %c0_52 = arith.constant 0 : index
    %c0_53 = arith.constant 0 : index
    %c0_54 = arith.constant 0 : index
    %149 = vector.load %arg8[%c0_52, %c0_53, %c0_54] : memref<2x1x64xf32, #tpu.memory_space<vmem>>, vector<1x1x64xf32>
    %150 = vector.shape_cast %149 : vector<1x1x64xf32> to vector<1x64xf32>
    %151 = vector.broadcast %150 : vector<1x64xf32> to vector<16x64xf32>
    %152 = arith.addf %148, %151 : vector<16x64xf32>
    %cst_55 = arith.constant 0.707106769 : f32
    %153 = vector.broadcast %cst_55 : f32 to vector<16x64xf32>
    %154 = arith.mulf %152, %153 : vector<16x64xf32>
    %155 = math.absf %154 : vector<16x64xf32>
    %cst_56 = arith.constant 0.327591091 : f32
    %156 = vector.broadcast %cst_56 : f32 to vector<16x64xf32>
    %157 = arith.mulf %156, %155 : vector<16x64xf32>
    %cst_57 = arith.constant 1.000000e+00 : f32
    %158 = vector.broadcast %cst_57 : f32 to vector<16x64xf32>
    %159 = arith.addf %158, %157 : vector<16x64xf32>
    %cst_58 = arith.constant 1.000000e+00 : f32
    %160 = vector.broadcast %cst_58 : f32 to vector<16x64xf32>
    %161 = arith.divf %160, %159 : vector<16x64xf32>
    %cst_59 = arith.constant 1.06140542 : f32
    %162 = vector.broadcast %cst_59 : f32 to vector<16x64xf32>
    %163 = arith.mulf %161, %162 : vector<16x64xf32>
    %cst_60 = arith.constant -1.45315206 : f32
    %164 = vector.broadcast %cst_60 : f32 to vector<16x64xf32>
    %165 = arith.addf %164, %163 : vector<16x64xf32>
    %166 = arith.mulf %161, %165 : vector<16x64xf32>
    %cst_61 = arith.constant 1.42141378 : f32
    %167 = vector.broadcast %cst_61 : f32 to vector<16x64xf32>
    %168 = arith.addf %167, %166 : vector<16x64xf32>
    %169 = arith.mulf %161, %168 : vector<16x64xf32>
    %cst_62 = arith.constant -0.284496725 : f32
    %170 = vector.broadcast %cst_62 : f32 to vector<16x64xf32>
    %171 = arith.addf %170, %169 : vector<16x64xf32>
    %172 = arith.mulf %161, %171 : vector<16x64xf32>
    %cst_63 = arith.constant 0.254829586 : f32
    %173 = vector.broadcast %cst_63 : f32 to vector<16x64xf32>
    %174 = arith.addf %173, %172 : vector<16x64xf32>
    %175 = arith.mulf %161, %174 : vector<16x64xf32>
    %cst_64 = arith.constant 0.000000e+00 : f32
    %176 = vector.broadcast %cst_64 : f32 to vector<16x64xf32>
    %177 = arith.subf %176, %155 : vector<16x64xf32>
    %178 = arith.mulf %177, %155 : vector<16x64xf32>
    %179 = math.exp %178 : vector<16x64xf32>
    %180 = arith.mulf %175, %179 : vector<16x64xf32>
    %cst_65 = arith.constant 1.000000e+00 : f32
    %181 = vector.broadcast %cst_65 : f32 to vector<16x64xf32>
    %182 = arith.subf %181, %180 : vector<16x64xf32>
    %cst_66 = arith.constant 0.000000e+00 : f32
    %183 = vector.broadcast %cst_66 : f32 to vector<16x64xf32>
    %184 = arith.cmpf oge, %154, %183 : vector<16x64xf32>
    %cst_67 = arith.constant 0.000000e+00 : f32
    %185 = vector.broadcast %cst_67 : f32 to vector<16x64xf32>
    %186 = arith.subf %185, %182 : vector<16x64xf32>
    %187 = arith.select %184, %182, %186 : vector<16x64xi1>, vector<16x64xf32>
    %cst_68 = arith.constant 5.000000e-01 : f32
    %188 = vector.broadcast %cst_68 : f32 to vector<16x64xf32>
    %189 = arith.mulf %188, %152 : vector<16x64xf32>
    %cst_69 = arith.constant 1.000000e+00 : f32
    %190 = vector.broadcast %cst_69 : f32 to vector<16x64xf32>
    %191 = arith.addf %190, %187 : vector<16x64xf32>
    %192 = arith.mulf %189, %191 : vector<16x64xf32>
    %c0_70 = arith.constant 0 : index
    %c0_71 = arith.constant 0 : index
    %c0_72 = arith.constant 0 : index
    %193 = vector.load %arg9[%c0_70, %c0_71, %c0_72] : memref<2x64x32xf32, #tpu.memory_space<vmem>>, vector<1x64x32xf32>
    %194 = vector.shape_cast %193 : vector<1x64x32xf32> to vector<64x32xf32>
    %cst_73 = arith.constant dense<0.000000e+00> : vector<16x32xf32>
    %195 = tpu.matmul %192, %194, %cst_73 {dimension_numbers = #tpu.dot_dimension_numbers<[1], [0], [0], [1], [0, 0, 1, 1], [], []>} : vector<16x64xf32>, vector<64x32xf32>, vector<16x32xf32> -> vector<16x32xf32>
    %196 = vector.broadcast %32 : vector<1x32xf32> to vector<16x32xf32>
    %197 = arith.addf %195, %196 : vector<16x32xf32>
    %198 = arith.addf %197, %145 : vector<16x32xf32>
    %cst_74 = arith.constant dense<0.000000e+00> : vector<16xf32>
    %199 = vector.multi_reduction <add>, %198, %cst_74 [1] : vector<16x32xf32> to vector<16xf32>
    %200 = vector.shape_cast %199 : vector<16xf32> to vector<16x1xf32>
    %cst_75 = arith.constant 3.200000e+01 : f32
    %201 = vector.broadcast %cst_75 : f32 to vector<16x1xf32>
    %202 = arith.divf %200, %201 : vector<16x1xf32>
    %203 = vector.broadcast %202 : vector<16x1xf32> to vector<16x32xf32>
    %204 = arith.subf %198, %203 : vector<16x32xf32>
    %205 = arith.mulf %204, %204 : vector<16x32xf32>
    %cst_76 = arith.constant dense<0.000000e+00> : vector<16xf32>
    %206 = vector.multi_reduction <add>, %205, %cst_76 [1] : vector<16x32xf32> to vector<16xf32>
    %207 = vector.shape_cast %206 : vector<16xf32> to vector<16x1xf32>
    %cst_77 = arith.constant 3.200000e+01 : f32
    %208 = vector.broadcast %cst_77 : f32 to vector<16x1xf32>
    %209 = arith.divf %207, %208 : vector<16x1xf32>
    %210 = vector.broadcast %202 : vector<16x1xf32> to vector<16x32xf32>
    %211 = arith.subf %198, %210 : vector<16x32xf32>
    %cst_78 = arith.constant 9.99999974E-6 : f32
    %212 = vector.broadcast %cst_78 : f32 to vector<16x1xf32>
    %213 = arith.addf %209, %212 : vector<16x1xf32>
    %214 = math.rsqrt %213 : vector<16x1xf32>
    %215 = vector.broadcast %214 : vector<16x1xf32> to vector<16x32xf32>
    %216 = arith.mulf %211, %215 : vector<16x32xf32>
    %217 = vector.broadcast %33 : vector<1x32xf32> to vector<16x32xf32>
    %218 = arith.mulf %216, %217 : vector<16x32xf32>
    %219 = vector.broadcast %34 : vector<1x32xf32> to vector<16x32xf32>
    %220 = arith.addf %218, %219 : vector<16x32xf32>
    %c1 = arith.constant 1 : index
    %c0_79 = arith.constant 0 : index
    %c0_80 = arith.constant 0 : index
    %221 = vector.load %arg6[%c1, %c0_79, %c0_80] : memref<2x6x32xf32, #tpu.memory_space<vmem>>, vector<1x6x32xf32>
    %222 = vector.shape_cast %221 : vector<1x6x32xf32> to vector<6x32xf32>
    %223 = vector.extract_strided_slice %222 {offsets = [0, 0], sizes = [1, 32], strides = [1, 1]} : vector<6x32xf32> to vector<1x32xf32>
    %224 = vector.extract_strided_slice %222 {offsets = [1, 0], sizes = [1, 32], strides = [1, 1]} : vector<6x32xf32> to vector<1x32xf32>
    %225 = vector.extract_strided_slice %222 {offsets = [2, 0], sizes = [1, 32], strides = [1, 1]} : vector<6x32xf32> to vector<1x32xf32>
    %226 = vector.extract_strided_slice %222 {offsets = [3, 0], sizes = [1, 32], strides = [1, 1]} : vector<6x32xf32> to vector<1x32xf32>
    %227 = vector.extract_strided_slice %222 {offsets = [4, 0], sizes = [1, 32], strides = [1, 1]} : vector<6x32xf32> to vector<1x32xf32>
    %228 = vector.extract_strided_slice %222 {offsets = [5, 0], sizes = [1, 32], strides = [1, 1]} : vector<6x32xf32> to vector<1x32xf32>
    %c1_81 = arith.constant 1 : index
    %c0_82 = arith.constant 0 : index
    %c0_83 = arith.constant 0 : index
    %229 = vector.load %arg5[%c1_81, %c0_82, %c0_83] : memref<2x32x32xf32, #tpu.memory_space<vmem>>, vector<1x32x32xf32>
    %230 = vector.shape_cast %229 : vector<1x32x32xf32> to vector<32x32xf32>
    %c1_84 = arith.constant 1 : index
    %c0_85 = arith.constant 0 : index
    %c0_86 = arith.constant 0 : index
    %231 = vector.load %arg3[%c1_84, %c0_85, %c0_86] : memref<2x32x96xf32, #tpu.memory_space<vmem>>, vector<1x32x96xf32>
    %232 = vector.shape_cast %231 : vector<1x32x96xf32> to vector<32x96xf32>
    %cst_87 = arith.constant dense<0.000000e+00> : vector<16x96xf32>
    %233 = tpu.matmul %220, %232, %cst_87 {dimension_numbers = #tpu.dot_dimension_numbers<[1], [0], [0], [1], [0, 0, 1, 1], [], []>} : vector<16x32xf32>, vector<32x96xf32>, vector<16x96xf32> -> vector<16x96xf32>
    %c1_88 = arith.constant 1 : index
    %c0_89 = arith.constant 0 : index
    %c0_90 = arith.constant 0 : index
    %234 = vector.load %arg4[%c1_88, %c0_89, %c0_90] : memref<2x1x96xf32, #tpu.memory_space<vmem>>, vector<1x1x96xf32>
    %235 = vector.shape_cast %234 : vector<1x1x96xf32> to vector<1x96xf32>
    %236 = vector.broadcast %235 : vector<1x96xf32> to vector<16x96xf32>
    %237 = arith.addf %233, %236 : vector<16x96xf32>
    %cst_91 = arith.constant 0.000000e+00 : f32
    %238 = vector.broadcast %cst_91 : f32 to vector<16x32xf32>
    %239 = vector.extract_strided_slice %237 {offsets = [0, 0], sizes = [16, 8], strides = [1, 1]} : vector<16x96xf32> to vector<16x8xf32>
    %240 = vector.extract_strided_slice %237 {offsets = [0, 32], sizes = [16, 8], strides = [1, 1]} : vector<16x96xf32> to vector<16x8xf32>
    %241 = vector.extract_strided_slice %237 {offsets = [0, 64], sizes = [16, 8], strides = [1, 1]} : vector<16x96xf32> to vector<16x8xf32>
    %cst_92 = arith.constant dense<0.000000e+00> : vector<16x16xf32>
    %242 = tpu.matmul %239, %240, %cst_92 {dimension_numbers = #tpu.dot_dimension_numbers<[1], [1], [0], [0], [0, 0, 1, 0], [], []>} : vector<16x8xf32>, vector<16x8xf32>, vector<16x16xf32> -> vector<16x16xf32>
    %243 = arith.addf %242, %26 : vector<16x16xf32>
    %cst_93 = arith.constant dense<0xFF800000> : vector<16xf32>
    %244 = vector.multi_reduction <maximumf>, %243, %cst_93 [1] : vector<16x16xf32> to vector<16xf32>
    %245 = vector.shape_cast %244 : vector<16xf32> to vector<16x1xf32>
    %246 = vector.broadcast %245 : vector<16x1xf32> to vector<16x16xf32>
    %247 = arith.subf %243, %246 : vector<16x16xf32>
    %248 = math.exp %247 : vector<16x16xf32>
    %cst_94 = arith.constant dense<0.000000e+00> : vector<16xf32>
    %249 = vector.multi_reduction <add>, %248, %cst_94 [1] : vector<16x16xf32> to vector<16xf32>
    %250 = vector.shape_cast %249 : vector<16xf32> to vector<16x1xf32>
    %251 = tpu.reciprocal %250 {approx = true} : vector<16x1xf32> -> vector<16x1xf32>
    %252 = vector.broadcast %251 : vector<16x1xf32> to vector<16x16xf32>
    %253 = arith.mulf %248, %252 : vector<16x16xf32>
    %cst_95 = arith.constant dense<0.000000e+00> : vector<16x8xf32>
    %254 = tpu.matmul %253, %241, %cst_95 {dimension_numbers = #tpu.dot_dimension_numbers<[1], [0], [0], [1], [0, 0, 1, 1], [], []>} : vector<16x16xf32>, vector<16x8xf32>, vector<16x8xf32> -> vector<16x8xf32>
    %255 = vector.extract_strided_slice %230 {offsets = [0, 0], sizes = [8, 32], strides = [1, 1]} : vector<32x32xf32> to vector<8x32xf32>
    %cst_96 = arith.constant dense<0.000000e+00> : vector<16x32xf32>
    %256 = tpu.matmul %254, %255, %cst_96 {dimension_numbers = #tpu.dot_dimension_numbers<[1], [0], [0], [1], [0, 0, 1, 1], [], []>} : vector<16x8xf32>, vector<8x32xf32>, vector<16x32xf32> -> vector<16x32xf32>
    %257 = arith.addf %238, %256 : vector<16x32xf32>
    %258 = vector.extract_strided_slice %237 {offsets = [0, 8], sizes = [16, 8], strides = [1, 1]} : vector<16x96xf32> to vector<16x8xf32>
    %259 = vector.extract_strided_slice %237 {offsets = [0, 40], sizes = [16, 8], strides = [1, 1]} : vector<16x96xf32> to vector<16x8xf32>
    %260 = vector.extract_strided_slice %237 {offsets = [0, 72], sizes = [16, 8], strides = [1, 1]} : vector<16x96xf32> to vector<16x8xf32>
    %cst_97 = arith.constant dense<0.000000e+00> : vector<16x16xf32>
    %261 = tpu.matmul %258, %259, %cst_97 {dimension_numbers = #tpu.dot_dimension_numbers<[1], [1], [0], [0], [0, 0, 1, 0], [], []>} : vector<16x8xf32>, vector<16x8xf32>, vector<16x16xf32> -> vector<16x16xf32>
    %262 = arith.addf %261, %26 : vector<16x16xf32>
    %cst_98 = arith.constant dense<0xFF800000> : vector<16xf32>
    %263 = vector.multi_reduction <maximumf>, %262, %cst_98 [1] : vector<16x16xf32> to vector<16xf32>
    %264 = vector.shape_cast %263 : vector<16xf32> to vector<16x1xf32>
    %265 = vector.broadcast %264 : vector<16x1xf32> to vector<16x16xf32>
    %266 = arith.subf %262, %265 : vector<16x16xf32>
    %267 = math.exp %266 : vector<16x16xf32>
    %cst_99 = arith.constant dense<0.000000e+00> : vector<16xf32>
    %268 = vector.multi_reduction <add>, %267, %cst_99 [1] : vector<16x16xf32> to vector<16xf32>
    %269 = vector.shape_cast %268 : vector<16xf32> to vector<16x1xf32>
    %270 = tpu.reciprocal %269 {approx = true} : vector<16x1xf32> -> vector<16x1xf32>
    %271 = vector.broadcast %270 : vector<16x1xf32> to vector<16x16xf32>
    %272 = arith.mulf %267, %271 : vector<16x16xf32>
    %cst_100 = arith.constant dense<0.000000e+00> : vector<16x8xf32>
    %273 = tpu.matmul %272, %260, %cst_100 {dimension_numbers = #tpu.dot_dimension_numbers<[1], [0], [0], [1], [0, 0, 1, 1], [], []>} : vector<16x16xf32>, vector<16x8xf32>, vector<16x8xf32> -> vector<16x8xf32>
    %274 = vector.extract_strided_slice %230 {offsets = [8, 0], sizes = [8, 32], strides = [1, 1]} : vector<32x32xf32> to vector<8x32xf32>
    %cst_101 = arith.constant dense<0.000000e+00> : vector<16x32xf32>
    %275 = tpu.matmul %273, %274, %cst_101 {dimension_numbers = #tpu.dot_dimension_numbers<[1], [0], [0], [1], [0, 0, 1, 1], [], []>} : vector<16x8xf32>, vector<8x32xf32>, vector<16x32xf32> -> vector<16x32xf32>
    %276 = arith.addf %257, %275 : vector<16x32xf32>
    %277 = vector.extract_strided_slice %237 {offsets = [0, 16], sizes = [16, 8], strides = [1, 1]} : vector<16x96xf32> to vector<16x8xf32>
    %278 = vector.extract_strided_slice %237 {offsets = [0, 48], sizes = [16, 8], strides = [1, 1]} : vector<16x96xf32> to vector<16x8xf32>
    %279 = vector.extract_strided_slice %237 {offsets = [0, 80], sizes = [16, 8], strides = [1, 1]} : vector<16x96xf32> to vector<16x8xf32>
    %cst_102 = arith.constant dense<0.000000e+00> : vector<16x16xf32>
    %280 = tpu.matmul %277, %278, %cst_102 {dimension_numbers = #tpu.dot_dimension_numbers<[1], [1], [0], [0], [0, 0, 1, 0], [], []>} : vector<16x8xf32>, vector<16x8xf32>, vector<16x16xf32> -> vector<16x16xf32>
    %281 = arith.addf %280, %26 : vector<16x16xf32>
    %cst_103 = arith.constant dense<0xFF800000> : vector<16xf32>
    %282 = vector.multi_reduction <maximumf>, %281, %cst_103 [1] : vector<16x16xf32> to vector<16xf32>
    %283 = vector.shape_cast %282 : vector<16xf32> to vector<16x1xf32>
    %284 = vector.broadcast %283 : vector<16x1xf32> to vector<16x16xf32>
    %285 = arith.subf %281, %284 : vector<16x16xf32>
    %286 = math.exp %285 : vector<16x16xf32>
    %cst_104 = arith.constant dense<0.000000e+00> : vector<16xf32>
    %287 = vector.multi_reduction <add>, %286, %cst_104 [1] : vector<16x16xf32> to vector<16xf32>
    %288 = vector.shape_cast %287 : vector<16xf32> to vector<16x1xf32>
    %289 = tpu.reciprocal %288 {approx = true} : vector<16x1xf32> -> vector<16x1xf32>
    %290 = vector.broadcast %289 : vector<16x1xf32> to vector<16x16xf32>
    %291 = arith.mulf %286, %290 : vector<16x16xf32>
    %cst_105 = arith.constant dense<0.000000e+00> : vector<16x8xf32>
    %292 = tpu.matmul %291, %279, %cst_105 {dimension_numbers = #tpu.dot_dimension_numbers<[1], [0], [0], [1], [0, 0, 1, 1], [], []>} : vector<16x16xf32>, vector<16x8xf32>, vector<16x8xf32> -> vector<16x8xf32>
    %293 = vector.extract_strided_slice %230 {offsets = [16, 0], sizes = [8, 32], strides = [1, 1]} : vector<32x32xf32> to vector<8x32xf32>
    %cst_106 = arith.constant dense<0.000000e+00> : vector<16x32xf32>
    %294 = tpu.matmul %292, %293, %cst_106 {dimension_numbers = #tpu.dot_dimension_numbers<[1], [0], [0], [1], [0, 0, 1, 1], [], []>} : vector<16x8xf32>, vector<8x32xf32>, vector<16x32xf32> -> vector<16x32xf32>
    %295 = arith.addf %276, %294 : vector<16x32xf32>
    %296 = vector.extract_strided_slice %237 {offsets = [0, 24], sizes = [16, 8], strides = [1, 1]} : vector<16x96xf32> to vector<16x8xf32>
    %297 = vector.extract_strided_slice %237 {offsets = [0, 56], sizes = [16, 8], strides = [1, 1]} : vector<16x96xf32> to vector<16x8xf32>
    %298 = vector.extract_strided_slice %237 {offsets = [0, 88], sizes = [16, 8], strides = [1, 1]} : vector<16x96xf32> to vector<16x8xf32>
    %cst_107 = arith.constant dense<0.000000e+00> : vector<16x16xf32>
    %299 = tpu.matmul %296, %297, %cst_107 {dimension_numbers = #tpu.dot_dimension_numbers<[1], [1], [0], [0], [0, 0, 1, 0], [], []>} : vector<16x8xf32>, vector<16x8xf32>, vector<16x16xf32> -> vector<16x16xf32>
    %300 = arith.addf %299, %26 : vector<16x16xf32>
    %cst_108 = arith.constant dense<0xFF800000> : vector<16xf32>
    %301 = vector.multi_reduction <maximumf>, %300, %cst_108 [1] : vector<16x16xf32> to vector<16xf32>
    %302 = vector.shape_cast %301 : vector<16xf32> to vector<16x1xf32>
    %303 = vector.broadcast %302 : vector<16x1xf32> to vector<16x16xf32>
    %304 = arith.subf %300, %303 : vector<16x16xf32>
    %305 = math.exp %304 : vector<16x16xf32>
    %cst_109 = arith.constant dense<0.000000e+00> : vector<16xf32>
    %306 = vector.multi_reduction <add>, %305, %cst_109 [1] : vector<16x16xf32> to vector<16xf32>
    %307 = vector.shape_cast %306 : vector<16xf32> to vector<16x1xf32>
    %308 = tpu.reciprocal %307 {approx = true} : vector<16x1xf32> -> vector<16x1xf32>
    %309 = vector.broadcast %308 : vector<16x1xf32> to vector<16x16xf32>
    %310 = arith.mulf %305, %309 : vector<16x16xf32>
    %cst_110 = arith.constant dense<0.000000e+00> : vector<16x8xf32>
    %311 = tpu.matmul %310, %298, %cst_110 {dimension_numbers = #tpu.dot_dimension_numbers<[1], [0], [0], [1], [0, 0, 1, 1], [], []>} : vector<16x16xf32>, vector<16x8xf32>, vector<16x8xf32> -> vector<16x8xf32>
    %312 = vector.extract_strided_slice %230 {offsets = [24, 0], sizes = [8, 32], strides = [1, 1]} : vector<32x32xf32> to vector<8x32xf32>
    %cst_111 = arith.constant dense<0.000000e+00> : vector<16x32xf32>
    %313 = tpu.matmul %311, %312, %cst_111 {dimension_numbers = #tpu.dot_dimension_numbers<[1], [0], [0], [1], [0, 0, 1, 1], [], []>} : vector<16x8xf32>, vector<8x32xf32>, vector<16x32xf32> -> vector<16x32xf32>
    %314 = arith.addf %295, %313 : vector<16x32xf32>
    %315 = vector.broadcast %223 : vector<1x32xf32> to vector<16x32xf32>
    %316 = arith.addf %314, %315 : vector<16x32xf32>
    %317 = arith.addf %316, %220 : vector<16x32xf32>
    %cst_112 = arith.constant dense<0.000000e+00> : vector<16xf32>
    %318 = vector.multi_reduction <add>, %317, %cst_112 [1] : vector<16x32xf32> to vector<16xf32>
    %319 = vector.shape_cast %318 : vector<16xf32> to vector<16x1xf32>
    %cst_113 = arith.constant 3.200000e+01 : f32
    %320 = vector.broadcast %cst_113 : f32 to vector<16x1xf32>
    %321 = arith.divf %319, %320 : vector<16x1xf32>
    %322 = vector.broadcast %321 : vector<16x1xf32> to vector<16x32xf32>
    %323 = arith.subf %317, %322 : vector<16x32xf32>
    %324 = arith.mulf %323, %323 : vector<16x32xf32>
    %cst_114 = arith.constant dense<0.000000e+00> : vector<16xf32>
    %325 = vector.multi_reduction <add>, %324, %cst_114 [1] : vector<16x32xf32> to vector<16xf32>
    %326 = vector.shape_cast %325 : vector<16xf32> to vector<16x1xf32>
    %cst_115 = arith.constant 3.200000e+01 : f32
    %327 = vector.broadcast %cst_115 : f32 to vector<16x1xf32>
    %328 = arith.divf %326, %327 : vector<16x1xf32>
    %329 = vector.broadcast %321 : vector<16x1xf32> to vector<16x32xf32>
    %330 = arith.subf %317, %329 : vector<16x32xf32>
    %cst_116 = arith.constant 9.99999974E-6 : f32
    %331 = vector.broadcast %cst_116 : f32 to vector<16x1xf32>
    %332 = arith.addf %328, %331 : vector<16x1xf32>
    %333 = math.rsqrt %332 : vector<16x1xf32>
    %334 = vector.broadcast %333 : vector<16x1xf32> to vector<16x32xf32>
    %335 = arith.mulf %330, %334 : vector<16x32xf32>
    %336 = vector.broadcast %224 : vector<1x32xf32> to vector<16x32xf32>
    %337 = arith.mulf %335, %336 : vector<16x32xf32>
    %338 = vector.broadcast %225 : vector<1x32xf32> to vector<16x32xf32>
    %339 = arith.addf %337, %338 : vector<16x32xf32>
    %c1_117 = arith.constant 1 : index
    %c0_118 = arith.constant 0 : index
    %c0_119 = arith.constant 0 : index
    %340 = vector.load %arg7[%c1_117, %c0_118, %c0_119] : memref<2x32x64xf32, #tpu.memory_space<vmem>>, vector<1x32x64xf32>
    %341 = vector.shape_cast %340 : vector<1x32x64xf32> to vector<32x64xf32>
    %cst_120 = arith.constant dense<0.000000e+00> : vector<16x64xf32>
    %342 = tpu.matmul %339, %341, %cst_120 {dimension_numbers = #tpu.dot_dimension_numbers<[1], [0], [0], [1], [0, 0, 1, 1], [], []>} : vector<16x32xf32>, vector<32x64xf32>, vector<16x64xf32> -> vector<16x64xf32>
    %c1_121 = arith.constant 1 : index
    %c0_122 = arith.constant 0 : index
    %c0_123 = arith.constant 0 : index
    %343 = vector.load %arg8[%c1_121, %c0_122, %c0_123] : memref<2x1x64xf32, #tpu.memory_space<vmem>>, vector<1x1x64xf32>
    %344 = vector.shape_cast %343 : vector<1x1x64xf32> to vector<1x64xf32>
    %345 = vector.broadcast %344 : vector<1x64xf32> to vector<16x64xf32>
    %346 = arith.addf %342, %345 : vector<16x64xf32>
    %cst_124 = arith.constant 0.707106769 : f32
    %347 = vector.broadcast %cst_124 : f32 to vector<16x64xf32>
    %348 = arith.mulf %346, %347 : vector<16x64xf32>
    %349 = math.absf %348 : vector<16x64xf32>
    %cst_125 = arith.constant 0.327591091 : f32
    %350 = vector.broadcast %cst_125 : f32 to vector<16x64xf32>
    %351 = arith.mulf %350, %349 : vector<16x64xf32>
    %cst_126 = arith.constant 1.000000e+00 : f32
    %352 = vector.broadcast %cst_126 : f32 to vector<16x64xf32>
    %353 = arith.addf %352, %351 : vector<16x64xf32>
    %cst_127 = arith.constant 1.000000e+00 : f32
    %354 = vector.broadcast %cst_127 : f32 to vector<16x64xf32>
    %355 = arith.divf %354, %353 : vector<16x64xf32>
    %cst_128 = arith.constant 1.06140542 : f32
    %356 = vector.broadcast %cst_128 : f32 to vector<16x64xf32>
    %357 = arith.mulf %355, %356 : vector<16x64xf32>
    %cst_129 = arith.constant -1.45315206 : f32
    %358 = vector.broadcast %cst_129 : f32 to vector<16x64xf32>
    %359 = arith.addf %358, %357 : vector<16x64xf32>
    %360 = arith.mulf %355, %359 : vector<16x64xf32>
    %cst_130 = arith.constant 1.42141378 : f32
    %361 = vector.broadcast %cst_130 : f32 to vector<16x64xf32>
    %362 = arith.addf %361, %360 : vector<16x64xf32>
    %363 = arith.mulf %355, %362 : vector<16x64xf32>
    %cst_131 = arith.constant -0.284496725 : f32
    %364 = vector.broadcast %cst_131 : f32 to vector<16x64xf32>
    %365 = arith.addf %364, %363 : vector<16x64xf32>
    %366 = arith.mulf %355, %365 : vector<16x64xf32>
    %cst_132 = arith.constant 0.254829586 : f32
    %367 = vector.broadcast %cst_132 : f32 to vector<16x64xf32>
    %368 = arith.addf %367, %366 : vector<16x64xf32>
    %369 = arith.mulf %355, %368 : vector<16x64xf32>
    %cst_133 = arith.constant 0.000000e+00 : f32
    %370 = vector.broadcast %cst_133 : f32 to vector<16x64xf32>
    %371 = arith.subf %370, %349 : vector<16x64xf32>
    %372 = arith.mulf %371, %349 : vector<16x64xf32>
    %373 = math.exp %372 : vector<16x64xf32>
    %374 = arith.mulf %369, %373 : vector<16x64xf32>
    %cst_134 = arith.constant 1.000000e+00 : f32
    %375 = vector.broadcast %cst_134 : f32 to vector<16x64xf32>
    %376 = arith.subf %375, %374 : vector<16x64xf32>
    %cst_135 = arith.constant 0.000000e+00 : f32
    %377 = vector.broadcast %cst_135 : f32 to vector<16x64xf32>
    %378 = arith.cmpf oge, %348, %377 : vector<16x64xf32>
    %cst_136 = arith.constant 0.000000e+00 : f32
    %379 = vector.broadcast %cst_136 : f32 to vector<16x64xf32>
    %380 = arith.subf %379, %376 : vector<16x64xf32>
    %381 = arith.select %378, %376, %380 : vector<16x64xi1>, vector<16x64xf32>
    %cst_137 = arith.constant 5.000000e-01 : f32
    %382 = vector.broadcast %cst_137 : f32 to vector<16x64xf32>
    %383 = arith.mulf %382, %346 : vector<16x64xf32>
    %cst_138 = arith.constant 1.000000e+00 : f32
    %384 = vector.broadcast %cst_138 : f32 to vector<16x64xf32>
    %385 = arith.addf %384, %381 : vector<16x64xf32>
    %386 = arith.mulf %383, %385 : vector<16x64xf32>
    %c1_139 = arith.constant 1 : index
    %c0_140 = arith.constant 0 : index
    %c0_141 = arith.constant 0 : index
    %387 = vector.load %arg9[%c1_139, %c0_140, %c0_141] : memref<2x64x32xf32, #tpu.memory_space<vmem>>, vector<1x64x32xf32>
    %388 = vector.shape_cast %387 : vector<1x64x32xf32> to vector<64x32xf32>
    %cst_142 = arith.constant dense<0.000000e+00> : vector<16x32xf32>
    %389 = tpu.matmul %386, %388, %cst_142 {dimension_numbers = #tpu.dot_dimension_numbers<[1], [0], [0], [1], [0, 0, 1, 1], [], []>} : vector<16x64xf32>, vector<64x32xf32>, vector<16x32xf32> -> vector<16x32xf32>
    %390 = vector.broadcast %226 : vector<1x32xf32> to vector<16x32xf32>
    %391 = arith.addf %389, %390 : vector<16x32xf32>
    %392 = arith.addf %391, %339 : vector<16x32xf32>
    %cst_143 = arith.constant dense<0.000000e+00> : vector<16xf32>
    %393 = vector.multi_reduction <add>, %392, %cst_143 [1] : vector<16x32xf32> to vector<16xf32>
    %394 = vector.shape_cast %393 : vector<16xf32> to vector<16x1xf32>
    %cst_144 = arith.constant 3.200000e+01 : f32
    %395 = vector.broadcast %cst_144 : f32 to vector<16x1xf32>
    %396 = arith.divf %394, %395 : vector<16x1xf32>
    %397 = vector.broadcast %396 : vector<16x1xf32> to vector<16x32xf32>
    %398 = arith.subf %392, %397 : vector<16x32xf32>
    %399 = arith.mulf %398, %398 : vector<16x32xf32>
    %cst_145 = arith.constant dense<0.000000e+00> : vector<16xf32>
    %400 = vector.multi_reduction <add>, %399, %cst_145 [1] : vector<16x32xf32> to vector<16xf32>
    %401 = vector.shape_cast %400 : vector<16xf32> to vector<16x1xf32>
    %cst_146 = arith.constant 3.200000e+01 : f32
    %402 = vector.broadcast %cst_146 : f32 to vector<16x1xf32>
    %403 = arith.divf %401, %402 : vector<16x1xf32>
    %404 = vector.broadcast %396 : vector<16x1xf32> to vector<16x32xf32>
    %405 = arith.subf %392, %404 : vector<16x32xf32>
    %cst_147 = arith.constant 9.99999974E-6 : f32
    %406 = vector.broadcast %cst_147 : f32 to vector<16x1xf32>
    %407 = arith.addf %403, %406 : vector<16x1xf32>
    %408 = math.rsqrt %407 : vector<16x1xf32>
    %409 = vector.broadcast %408 : vector<16x1xf32> to vector<16x32xf32>
    %410 = arith.mulf %405, %409 : vector<16x32xf32>
    %411 = vector.broadcast %227 : vector<1x32xf32> to vector<16x32xf32>
    %412 = arith.mulf %410, %411 : vector<16x32xf32>
    %413 = vector.broadcast %228 : vector<1x32xf32> to vector<16x32xf32>
    %414 = arith.addf %412, %413 : vector<16x32xf32>
    %415 = vector.extract_strided_slice %414 {offsets = [0, 0], sizes = [1, 32], strides = [1, 1]} : vector<16x32xf32> to vector<1x32xf32>
    %416 = vector.extract_strided_slice %414 {offsets = [8, 0], sizes = [1, 32], strides = [1, 1]} : vector<16x32xf32> to vector<1x32xf32>
    %417 = tpu.concatenate %415, %416 in 0 : vector<1x32xf32>, vector<1x32xf32> -> vector<2x32xf32>
    %c0_148 = arith.constant 0 : index
    %c0_149 = arith.constant 0 : index
    %418 = vector.load %arg10[%c0_148, %c0_149] : memref<32x128xf32, #tpu.memory_space<vmem>>, vector<32x128xf32>
    %cst_150 = arith.constant dense<0.000000e+00> : vector<2x128xf32>
    %419 = tpu.matmul %417, %418, %cst_150 {dimension_numbers = #tpu.dot_dimension_numbers<[1], [0], [0], [1], [0, 0, 1, 1], [], []>} : vector<2x32xf32>, vector<32x128xf32>, vector<2x128xf32> -> vector<2x128xf32>
    %c0_151 = arith.constant 0 : index
    %c0_152 = arith.constant 0 : index
    %420 = vector.load %arg11[%c0_151, %c0_152] : memref<1x128xf32, #tpu.memory_space<vmem>>, vector<1x128xf32>
    %421 = vector.broadcast %420 : vector<1x128xf32> to vector<2x128xf32>
    %422 = arith.addf %419, %421 : vector<2x128xf32>
    %c0_153 = arith.constant 0 : index
    %c0_154 = arith.constant 0 : index
    %423 = vector.load %arg12[%c0_153, %c0_154] : memref<2x128xf32, #tpu.memory_space<vmem>>, vector<2x128xf32>
    tpu.vector_store %arg12[%c0_153, %c0_154], %422 {strides = array<i32>} : memref<2x128xf32, #tpu.memory_space<vmem>>, vector<2x128xf32>,
    return
  }
}

</mosaic_0001>

<bundles_post_ra>
// kernel: eq.8
= control target key start
LH: loop header
LB: loop body
LE: loop exit
PB: predicated region body
PF: predicated region fallthrough
CT: control target
= control target key end

     0   :  { %vm7_vm0 = vcmask 64512   ;;  %vm13_vm1 = vcmask 130112   ;;  %s39_s0 = inlined_call_operand.vmem [shape: s32[2,8], index: 0, kind: input, shape index: {}]   ;;  %s40_s1 = inlined_call_operand.vmem [shape: s32[16], index: 1, kind: output, shape index: {}]  }
   0x1   :  { %v4_v0 = vld [vmem:[%s39_s0] sm:$0x3]  ;;  %s22_s0 = smov 8  }
   0x2   :  { %5 = vst [vmem:[#allocation1] sm:$0x3] %v4_v0 }
   0x9   :  { %v10_v1 = vld [vmem:[#allocation1 + $0x1] sm:$0x1]   ;;  %v6_v2 = vld [vmem:[#allocation1] sm:$0x1]  }
   0xa   :  { %11 = vrot.lane.b32.xlu0 %v10_v1, %s22_s0  ;;  %8 = vst.msk [vmem:[#allocation0] sm:$0x1] %vm7_vm0, %v6_v2  }
  0x7c   :  { %v12_v3 = vpop.permute.xlu0 %11  }
  0x7d   :  { %14 = vst.msk [vmem:[#allocation0] sm:$0x1] %vm13_vm1, %v12_v3  }
  0x84   :  { %v18_v4 = vld [vmem:[#allocation0] sm:$0x1] }
  0x85   :  { %20 = vst [vmem:[%s40_s1] sm:$0x1] %v18_v4 }

// kernel: codebert_classifier_forward.1
= control target key start
LH: loop header
LB: loop body
LE: loop exit
PB: predicated region body
PF: predicated region fallthrough
CT: control target
= control target key end

     0   :  { %vm45_vm0 = vcmask 261120   ;;  %s4776_s0 = inlined_call_operand.vmem [shape: f32[16,32], index: 0, kind: input, shape index: {}]   ;;  %s4777_s1 = inlined_call_operand.vmem [shape: f32[16,16], index: 1, kind: input, shape index: {}]   ;;  %s4778_s2 = inlined_call_operand.vmem [shape: f32[2,32], index: 2, kind: input, shape index: {}]   ;;  %s4779_s3 = inlined_call_operand.vmem [shape: f32[2,32,96], index: 3, kind: input, shape index: {}]   ;;  %s4780_s4 = inlined_call_operand.vmem [shape: f32[2,1,96], index: 4, kind: input, shape index: {}]   ;;  %s4781_s5 = inlined_call_operand.vmem [shape: f32[2,32,32], index: 5, kind: input, shape index: {}]   ;;  %s4782_s6 = inlined_call_operand.vmem [shape: f32[2,6,32], index: 6, kind: input, shape index: {}]   ;;  %s4783_s7 = inlined_call_operand.vmem [shape: f32[2,32,64], index: 7, kind: input, shape index: {}]   ;;  %s4784_s8 = inlined_call_operand.vmem [shape: f32[2,1,64], index: 8, kind: input, shape index: {}]   ;;  %s4785_s9 = inlined_call_operand.vmem [shape: f32[2,64,32], index: 9, kind: input, shape index: {}]   ;;  %s4786_s10 = inlined_call_operand.vmem [shape: f32[32,128], index: 10, kind: input, shape index: {}]   ;;  %s4787_s11 = inlined_call_operand.vmem [shape: f32[1,128], index: 11, kind: input, shape index: {}]   ;;  %s4788_s12 = inlined_call_operand.hbm [shape: f32[2,128], index: 12, kind: output, shape index: {}]  }
   0x1   :  { %v43_v0 = vld [vmem:[%s4776_s0] sm:$0xff]  ;;  %v44_v1 = vld [vmem:[%s4776_s0 + $0x8] sm:$0xff] }
   0x2   :  { %17 = vsyncpa [#allocation3], 0  ;;  %v46_v2 = vsel %vm45_vm0, %v43_v0, 0.0  ;;  %v49_v3 = vsel %vm45_vm0, %v44_v1, 0.0  ;;  %v92_v14 = vld [vmem:[%s4779_s3] sm:$0xff]  ;;  %v93_v15 = vld [vmem:[%s4779_s3 + $0x8] sm:$0xff]  ;;  %v73_v22 = vlaneseq }
   0x3   :  { %47 = vadd.xlane.f32.xlu0 %v46_v2  ;;  %v94_v16 = vld [vmem:[%s4779_s3 + $0x10] sm:$0xff]  ;;  %v3784_v17 = vpack.c.bf16 %v93_v15, %v92_v14  ;;  %v95_v18 = vld [vmem:[%s4779_s3 + $0x18] sm:$0xff]  ;;  %v42_v29 = vld [vmem:[%s4778_s2] sm:$0x3]  ;;  %vm190_vm1 = vcmask 64512   ;;  %s4167_s17 = smov 96  }
   0x4   :  { %v3788_v19 = vpack.c.bf16 %v95_v18, %v94_v16  ;;  %v4269_v26 = vshrl.u32 %v73_v22, 7  ;;  %v3297_v41 = vld [vmem:[%s4780_s4] ss:$0 sm:$0xff]  ;;  %s4168_s18 = smov 88   ;;  %s4169_s19 = smov 120   ;;  %vm4315_vm2 = vmpackc.low %vm190_vm1, %vm190_vm1  ;;  %v4333_v54 = vld [vmem:[%s4777_s1 + $0x8] sm:$0xff] }
   0x5   :  { %3785 = vmatprep.subr.bf16.mxu0 %v3784_v17  ;;  %s4170_s20 = smov 112   ;;  %v4328_v52 = vld [vmem:[%s4777_s1] sm:$0xff]  ;;  %vm274_vm3 = vcmask 130048   ;;  %s4171_s0 = smov 64   ;;  %vm1516_vm6 = vcmask 523264   ;;  %vm4179_vm9 = vmmov 0  }
   0x6   :  { %3787 = vmatpush3.bf16.msra.mxu0 %v3784_v17  ;;  %v4272_v28 = vsub.s32 0, %v4269_v26  ;;  %v4278_v30 = vsub.s32 1, %v4269_v26  ;;  %s4172_s25 = smov 80   ;;  %s4173_s26 = smov 72   ;;  %vm3196_vm10 = vcmask 1040384  }
   0x7   :  { %50 = vadd.xlane.f32.xlu0 %v49_v3  ;;  %3789 = vmatprep.subr.bf16.mxu0 %v3788_v19  ;;  %s4174_s27 = smov 104   ;;  %s4175_s28 = smov 56  }
   0x8   :  { %v76_v31 = vrot.slane %v42_v29, %v4272_v28  ;;  %v82_v34 = vrot.slane %v42_v29, %v4278_v30  ;;  %s4176_s29 = smov 48   ;;  %s4177_s2 = smov 40  }
   0x9   :  { %s4181_s22 = smov [#allocation2]  }
   0xa   :  { %3791 = vmatpush3.bf16.msra.mxu0 %v3788_v19 }
  0x90   :  { %v48_v4 = vpop.xlane.xlu0 %47 }
  0x91   :  { %v53_v5 = vmul.f32 0.03125, %v48_v4 }
  0x93   :  { %v55_v6 = vsub.f32 %v43_v0, %v53_v5 }
  0x94   :  { %v51_v7 = vpop.xlane.xlu0 %50 }
  0x95   :  { %v54_v8 = vmul.f32 0.03125, %v51_v7  ;;  %v57_v9 = vmul.f32 %v55_v6, %v55_v6 }
  0x97   :  { %v56_v10 = vsub.f32 %v44_v1, %v54_v8  ;;  %v59_v11 = vsel %vm45_vm0, %v57_v9, 0.0 }
  0x98   :  { %60 = vadd.xlane.f32.xlu1 %v59_v11 }
  0x99   :  { %v58_v12 = vmul.f32 %v56_v10, %v56_v10 }
  0x9b   :  { %v62_v13 = vsel %vm45_vm0, %v58_v12, 0.0 }
  0x9c   :  { %63 = vadd.xlane.f32.xlu1 %v62_v13 }
 0x125   :  { %v61_v20 = vpop.xlane.xlu1 %60 }
 0x126   :  { %v65_v21 = vmul.f32 0.03125, %v61_v20 }
 0x128   :  { %v67_v23 = vadd.f32 1e-05, %v65_v21 }
 0x129   :  { %v64_v24 = vpop.xlane.xlu1 %63 }
 0x12a   :  { %4041 = vrsqrt.f32 %v67_v23  ;;  %v66_v25 = vmul.f32 0.03125, %v64_v24 }
 0x12c   :  { %v68_v27 = vadd.f32 1e-05, %v66_v25 }
 0x12e   :  { %4043 = vrsqrt.f32 %v68_v27 }
 0x134   :  { %v4042_v32 = vpop.eup %4041 }
 0x135   :  { %v71_v33 = vmul.f32 %v4042_v32, %v55_v6 }
 0x137   :  { %v77_v35 = vmul.f32 %v76_v31, %v71_v33 }
 0x138   :  { %v4044_v36 = vpop.eup %4043 }
 0x139   :  { %v72_v37 = vmul.f32 %v4044_v36, %v56_v10  ;;  %v4282_v38 = vadd.f32 %v82_v34, %v77_v35 }
 0x13b   :  { %v78_v39 = vmul.f32 %v76_v31, %v72_v37  ;;  %3547 = vmatprep.mubr.msk.f32.mxu0 %vm45_vm0, %v4282_v38 }
 0x13d   :  { %v4286_v40 = vadd.f32 %v82_v34, %v78_v39 }
 0x13f   :  { %3548 = vmatmul.mubr.msk.f32.vlgmr.msra.gmra.mrb[0].mxu0 %vm45_vm0, %v4286_v40 }
 0x212   :  { %v3549_v42 = vpop.f32.mrb[0].mxu0 }
 0x213   :  { %v4293_v43 = vadd.f32 %v3549_v42, %v3297_v41  ;;  %v175_v44 = vpop.f32.mrb[1].mxu0 }
 0x214   :  { %v4295_v45 = vadd.f32 %v3297_v41, %v175_v44 }
 0x216   :  { %3554 = vmatprep.mubr.msk.f32.mxu1 %vm190_vm1, %v4295_v45  ;;  %v4301_v46 = vpack.i.bf16 %v4293_v43, %v4295_v45 }
 0x218   :  { %3962 = vrot.lane.b32.xlu0 %v4301_v46, %s4167_s17 }
 0x21c   :  { %3972 = vrot.lane.b32.xlu0 %v4301_v46, %s4168_s18 }
 0x220   :  { %384 = vrot.lane.b32.xlu0 %v4295_v45, %s4169_s19 }
 0x224   :  { %386 = vrot.lane.b32.xlu0 %v4293_v43, %s4169_s19 }
 0x228   :  { %746 = vrot.lane.b32.xlu0 %v4295_v45, %s4170_s20 }
 0x28a   :  { %v3963_v47 = vpop.permute.xlu0 %3962 }
 0x28b   :  { %v3965_v48 = vunpack.i.h.bf16 %v3963_v47  ;;  %v3964_v49 = vunpack.i.l.bf16 %v3963_v47 }
 0x28d   :  { %v3792_v51 = vpack.c.bf16 %v3965_v48, %v3964_v49 }
 0x28e   :  { %v3973_v8 = vpop.permute.xlu0 %3972 }
 0x28f   :  { %3794 = vmatprep.subr.msk.bf16.mxu1 %vm4315_vm2, %v3792_v51  ;;  %v3975_v10 = vunpack.i.h.bf16 %v3973_v8  ;;  %v3974_v11 = vunpack.i.l.bf16 %v3973_v8 }
 0x290   :  { %3797 = vmatpush3.bf16.xpose.msk.msra.mxu1 %vm4315_vm2, %v3792_v51 }
 0x291   :  { %v3802_v15 = vpack.c.bf16 %v3975_v10, %v3974_v11 }
 0x292   :  { %v385_v21 = vpop.permute.xlu0 %384 }
 0x296   :  { %v387_v25 = vpop.permute.xlu0 %386 }
 0x297   :  { %3555 = vmatmul.mubr.msk.f32.vlgmr.msra.gmra.mrb[0].mxu1 %vm190_vm1, %v4293_v43 }
 0x29a   :  { %v747_v27 = vpop.permute.xlu0 %746 }
 0x36a   :  { %v3556_v53 = vpop.f32.mrb[0].mxu1 }
 0x36b   :  { %v265_v55 = vpop.f32.mrb[1].mxu1  ;;  %v271_v57 = vadd.f32 %v3556_v53, %v4333_v54 }
 0x36c   :  { %v266_v56 = vadd.f32 %v265_v55, %v4328_v52 }
 0x36d   :  { %v278_v59 = vsel %vm274_vm3, %v271_v57, -inf }
 0x36e   :  { %v275_v58 = vsel %vm274_vm3, %v266_v56, -inf }
 0x36f   :  { %276 = vmax.xlane.f32.xlu1 %v275_v58 }
 0x373   :  { %279 = vmax.xlane.f32.xlu1 %v278_v59 }
 0x3fc   :  { %v277_v60 = vpop.xlane.xlu1 %276 }
 0x3fd   :  { %v281_v61 = vsub.f32 %v266_v56, %v277_v60 }
 0x3ff   :  { %v283_v0 = vmul.f32 1.442695, %v281_v61 }
 0x400   :  { %v280_v62 = vpop.xlane.xlu1 %279 }
 0x401   :  { %v282_v63 = vsub.f32 %v271_v57, %v280_v62 }
 0x403   :  { %v285_v1 = vmul.f32 1.442695, %v282_v63 }
 0x405   :  { %4045 = vpow2.f32 %v285_v1 }
 0x406   :  { %4047 = vpow2.f32 %v283_v0 }
 0x40f   :  { %v4046_v2 = vpop.eup %4045 }
 0x410   :  { %v290_v3 = vsel %vm274_vm3, %v4046_v2, 0.0  ;;  %v4048_v4 = vpop.eup %4047 }
 0x411   :  { %291 = vadd.xlane.f32.xlu1 %v290_v3  ;;  %v287_v5 = vsel %vm274_vm3, %v4048_v4, 0.0 }
 0x415   :  { %288 = vadd.xlane.f32.xlu1 %v287_v5 }
 0x426   :  { %3967 = vrot.lane.b32.xlu1 %v4301_v46, %s4171_s0 }
 0x42a   :  { %3977 = vrot.lane.b32.xlu1 %v4301_v46, %s4172_s25 }
 0x42e   :  { %748 = vrot.lane.b32.xlu1 %v4293_v43, %s4170_s20 }
 0x49e   :  { %v292_v6 = vpop.xlane.xlu1 %291 }
 0x49f   :  { %4049 = vrcp.f32 %v292_v6 }
 0x4a2   :  { %v289_v7 = vpop.xlane.xlu1 %288 }
 0x4a3   :  { %4051 = vrcp.f32 %v289_v7 }
 0x4a6   :  { %v3968_v9 = vpop.permute.xlu1 %3967 }
 0x4a7   :  { %v3970_v12 = vunpack.i.h.bf16 %v3968_v9  ;;  %v3969_v13 = vunpack.i.l.bf16 %v3968_v9 }
 0x4a9   :  { %v3798_v14 = vpack.c.bf16 %v3970_v12, %v3969_v13  ;;  %v4050_v16 = vpop.eup %4049 }
 0x4aa   :  { %v3978_v18 = vpop.permute.xlu1 %3977  ;;  %v296_v20 = vmul.f32 %v4050_v16, %v4046_v2 }
 0x4ab   :  { %3799 = vmatprep.subr.bf16.mxu1 %v3798_v14  ;;  %v3980_v22 = vunpack.i.h.bf16 %v3978_v18  ;;  %v3979_v23 = vunpack.i.l.bf16 %v3978_v18 }
 0x4ac   :  { %3801 = vmatpush3.bf16.msra.mxu1 %v3798_v14 }
 0x4ad   :  { %v4052_v17 = vpop.eup %4051  ;;  %3804 = vmatprep.subr.msk.bf16.mxu1 %vm4315_vm2, %v3802_v15  ;;  %v3812_v24 = vpack.c.bf16 %v3980_v22, %v3979_v23 }
 0x4ae   :  { %v295_v19 = vmul.f32 %v4052_v17, %v4048_v4  ;;  %v749_v29 = vpop.permute.xlu1 %748 }
 0x4b0   :  { %3561 = vmatprep.mubr.msk.f32.mxu1 %vm274_vm3, %v295_v19 }
 0x4b1   :  { %3562 = vmatmul.mubr.msk.f32.vlgmr.msra.gmra.mrb[2].mxu1 %vm274_vm3, %v296_v20 }
 0x4b2   :  { %3568 = vmatprep.mubr.msk.f32.mxu1 %vm190_vm1, %v385_v21 }
 0x4b5   :  { %3807 = vmatpush3.bf16.xpose.msk.msra.mxu1 %vm4315_vm2, %v3802_v15 }
 0x4b6   :  { %3814 = vmatprep.subr.msk.bf16.mxu1 %vm4315_vm2, %v3812_v24 }
 0x4bc   :  { %3569 = vmatmul.mubr.msk.f32.vlgmr.msra.gmra.mrb[4].mxu1 %vm190_vm1, %v387_v25 }
 0x4bd   :  { %3817 = vmatpush3.bf16.xpose.msk.msra.mxu1 %vm4315_vm2, %v3812_v24  ;;  %3592 = vmatprep.mubr.msk.f32.mxu1 %vm190_vm1, %v747_v27 }
 0x4c4   :  { %3593 = vmatmul.mubr.msk.f32.vlgmr.msra.gmra.mrb[6].mxu1 %vm190_vm1, %v749_v29 }
 0x584   :  { %v4361_v31 = vpop.f32.mrb[2].mxu1 }
 0x585   :  { %v4363_v32 = vpop.f32.mrb[3].mxu1 }
 0x58f   :  { %v3570_v33 = vpop.f32.mrb[4].mxu1 }
 0x590   :  { %v472_v34 = vadd.f32 %v3570_v33, %v4333_v54  ;;  %v466_v35 = vpop.f32.mrb[5].mxu1 }
 0x591   :  { %v467_v36 = vadd.f32 %v466_v35, %v4328_v52  ;;  %v88_v35 = vld [vmem:[%s4781_s5] sm:$0xff] }
 0x592   :  { %v478_v37 = vsel %vm274_vm3, %v472_v34, -inf }
 0x593   :  { %479 = vmax.xlane.f32.xlu1 %v478_v37  ;;  %v475_v39 = vsel %vm274_vm3, %v467_v36, -inf }
 0x594   :  { %476 = vmax.xlane.f32.xlu0 %v475_v39 }
 0x597   :  { %v3594_v41 = vpop.f32.mrb[6].mxu1 }
 0x598   :  { %v828_v42 = vpop.f32.mrb[7].mxu1  ;;  %v834_v44 = vadd.f32 %v3594_v41, %v4333_v54 }
 0x599   :  { %v829_v4 = vadd.f32 %v828_v42, %v4328_v52 }
 0x59a   :  { %v840_v47 = vsel %vm274_vm3, %v834_v44, -inf }
 0x59b   :  { %v837_v5 = vsel %vm274_vm3, %v829_v4, -inf }
 0x5a4   :  { %3987 = vrot.lane.b32.xlu1 %v4301_v46, %s4173_s26 }
 0x5a8   :  { %1029 = vrot.lane.b32.xlu1 %v4295_v45, %s4174_s27 }
 0x5ac   :  { %1031 = vrot.lane.b32.xlu1 %v4293_v43, %s4174_s27 }
 0x5d0   :  { %841 = vmax.xlane.f32.xlu1 %v840_v47 }
 0x620   :  { %v480_v48 = vpop.xlane.xlu1 %479 }
 0x621   :  { %v482_v49 = vsub.f32 %v472_v34, %v480_v48  ;;  %v477_v51 = vpop.xlane.xlu0 %476  ;;  %v89_v34 = vld [vmem:[%s4781_s5 + $0x8] sm:$0xff] }
 0x622   :  { %v481_v53 = vsub.f32 %v467_v36, %v477_v51 }
 0x623   :  { %v485_v55 = vmul.f32 1.442695, %v482_v49 }
 0x624   :  { %v483_v56 = vmul.f32 1.442695, %v481_v53  ;;  %v3988_v57 = vpop.permute.xlu1 %3987 }
 0x625   :  { %4053 = vpow2.f32 %v485_v55  ;;  %v3990_v58 = vunpack.i.h.bf16 %v3988_v57  ;;  %v3989_v59 = vunpack.i.l.bf16 %v3988_v57 }
 0x626   :  { %4055 = vpow2.f32 %v483_v56 }
 0x627   :  { %v3822_v45 = vpack.c.bf16 %v3990_v58, %v3989_v59 }
 0x628   :  { %v1030_v60 = vpop.permute.xlu1 %1029 }
 0x629   :  { %3824 = vmatprep.subr.msk.bf16.mxu1 %vm4315_vm2, %v3822_v45  ;;  %3611 = vmatprep.mubr.msk.f32.mxu1 %vm190_vm1, %v1030_v60 }
 0x62a   :  { %3827 = vmatpush3.bf16.xpose.msk.msra.mxu1 %vm4315_vm2, %v3822_v45 }
 0x62c   :  { %v1032_v61 = vpop.permute.xlu1 %1031 }
 0x62f   :  { %v4054_v43 = vpop.eup %4053 }
 0x630   :  { %v490_v62 = vsel %vm274_vm3, %v4054_v43, 0.0  ;;  %v4056_v63 = vpop.eup %4055 }
 0x631   :  { %3612 = vmatmul.mubr.msk.f32.vlgmr.msra.gmra.mrb[8].mxu1 %vm190_vm1, %v1032_v61  ;;  %491 = vadd.xlane.f32.xlu0 %v490_v62  ;;  %v487_v0 = vsel %vm274_vm3, %v4056_v63, 0.0 }
 0x635   :  { %488 = vadd.xlane.f32.xlu0 %v487_v0 }
 0x64b   :  { %3982 = vrot.lane.b32.xlu0 %v4301_v46, %s4175_s28 }
 0x65d   :  { %v842_v1 = vpop.xlane.xlu1 %841 }
 0x65e   :  { %v844_v2 = vsub.f32 %v834_v44, %v842_v1 }
 0x660   :  { %v847_v3 = vmul.f32 1.442695, %v844_v2 }
 0x662   :  { %4057 = vpow2.f32 %v847_v3 }
 0x66a   :  { %838 = vmax.xlane.f32.xlu0 %v837_v5 }
 0x66c   :  { %v4389_v6 = vpop.eup %4057 }
 0x66d   :  { %v852_v7 = vsel %vm274_vm3, %v4389_v6, 0.0 }
 0x66e   :  { %853 = vadd.xlane.f32.xlu0 %v852_v7 }
 0x6be   :  { %v492_v8 = vpop.xlane.xlu0 %491 }
 0x6bf   :  { %4059 = vrcp.f32 %v492_v8 }
 0x6c2   :  { %v489_v9 = vpop.xlane.xlu0 %488 }
 0x6c3   :  { %4061 = vrcp.f32 %v489_v9  ;;  %v91_v9 = vld [vmem:[%s4781_s5 + $0x18] sm:$0xff] }
 0x6c6   :  { %v3983_v10 = vpop.permute.xlu0 %3982 }
 0x6c7   :  { %v3985_v11 = vunpack.i.h.bf16 %v3983_v10  ;;  %v3984_v12 = vunpack.i.l.bf16 %v3983_v10 }
 0x6c9   :  { %v3808_v13 = vpack.c.bf16 %v3985_v11, %v3984_v12  ;;  %v4060_v14 = vpop.eup %4059 }
 0x6ca   :  { %v496_v17 = vmul.f32 %v4060_v14, %v4054_v43 }
 0x6cb   :  { %3809 = vmatprep.subr.bf16.mxu0 %v3808_v13 }
 0x6cc   :  { %3811 = vmatpush3.bf16.msra.mxu0 %v3808_v13  ;;  %v4436_v13 = vld [vmem:[%s4782_s6] sm:$0x3f] }
 0x6cd   :  { %v4062_v15 = vpop.eup %4061  ;;  %3578 = vmatprep.subr.mxu0 %v89_v34  ;;  %v1315_v14 = vrot.slane %v4436_v13, %v4272_v28 }
 0x6ce   :  { %v495_v16 = vmul.f32 %v4062_v15, %v4056_v63  ;;  %v90_v63 = vld [vmem:[%s4781_s5 + $0x10] sm:$0xff] }
 0x6d0   :  { %3575 = vmatprep.mubr.msk.f32.mxu0 %vm274_vm3, %v495_v16 }
 0x6d1   :  { %3576 = vmatmul.mubr.msk.f32.vlgmr.msra.gmra.mrb[2].mxu0 %vm274_vm3, %v496_v17 }
 0x6d2   :  { %3579 = vmatpush3.msra.mxu0 %v89_v34 }
 0x6d3   :  { %3583 = vmatprep.subr.mxu0 %v88_v35 }
 0x6f7   :  { %v839_v18 = vpop.xlane.xlu0 %838 }
 0x6f8   :  { %v843_v19 = vsub.f32 %v829_v4, %v839_v18 }
 0x6fa   :  { %v845_v20 = vmul.f32 1.442695, %v843_v19 }
 0x6fb   :  { %v854_v36 = vpop.xlane.xlu0 %853 }
 0x6fc   :  { %4063 = vpow2.f32 %v845_v20 }
 0x704   :  { %v3613_v21 = vpop.f32.mrb[8].mxu1 }
 0x705   :  { %v1111_v22 = vpop.f32.mrb[9].mxu1  ;;  %v1117_v27 = vadd.f32 %v3613_v21, %v4333_v54 }
 0x706   :  { %v4064_v23 = vpop.eup %4063  ;;  %v1112_v24 = vadd.f32 %v1111_v22, %v4328_v52 }
 0x707   :  { %v849_v25 = vsel %vm274_vm3, %v4064_v23, 0.0  ;;  %v1123_v33 = vsel %vm274_vm3, %v1117_v27, -inf }
 0x708   :  { %850 = vadd.xlane.f32.xlu0 %v849_v25  ;;  %v1120_v29 = vsel %vm274_vm3, %v1112_v24, -inf }
 0x709   :  { %1121 = vmax.xlane.f32.xlu1 %v1120_v29 }
 0x70d   :  { %1124 = vmax.xlane.f32.xlu1 %v1123_v33 }
 0x71e   :  { %3992 = vrot.lane.b32.xlu0 %v4301_v46, %s4176_s29 }
 0x795   :  { %v851_v41 = vpop.xlane.xlu0 %850 }
 0x796   :  { %v1122_v37 = vpop.xlane.xlu1 %1121 }
 0x797   :  { %v1126_v39 = vsub.f32 %v1112_v24, %v1122_v37  ;;  %v1359_v37 = vld [vmem:[%s4783_s7 + $0x8] sm:$0xff] }
 0x799   :  { %v1128_v47 = vmul.f32 1.442695, %v1126_v39  ;;  %v3993_v49 = vpop.permute.xlu0 %3992 }
 0x79a   :  { %v1125_v42 = vpop.xlane.xlu1 %1124  ;;  %v3995_v51 = vunpack.i.h.bf16 %v3993_v49  ;;  %v3994_v53 = vunpack.i.l.bf16 %v3993_v49 }
 0x79b   :  { %v1127_v44 = vsub.f32 %v1117_v27, %v1125_v42  ;;  %v1361_v42 = vld [vmem:[%s4783_s7 + $0x18] sm:$0xff] }
 0x79c   :  { %v3818_v57 = vpack.c.bf16 %v3995_v51, %v3994_v53 }
 0x79d   :  { %v1130_v48 = vmul.f32 1.442695, %v1127_v44 }
 0x79f   :  { %4065 = vpow2.f32 %v1130_v48 }
 0x7a0   :  { %4067 = vrcp.f32 %v851_v41  ;;  %v1360_v41 = vld [vmem:[%s4783_s7 + $0x10] sm:$0xff] }
 0x7a1   :  { %4069 = vpow2.f32 %v1128_v47  ;;  %v3836_v44 = vpack.c.bf16 %v1361_v42, %v1360_v41 }
 0x7a2   :  { %4071 = vrcp.f32 %v854_v36 }
 0x7a4   :  { %v3577_v55 = vpop.f32.mrb[2].mxu0 }
 0x7a5   :  { %v575_v56 = vpop.f32.mrb[3].mxu0 }
 0x7a6   :  { %3580 = vmatprep.mubr.msk.f32.mxu0 %vm190_vm1, %v575_v56  ;;  %v1354_v56 = vsub.s32 2, %v4269_v26 }
 0x7a7   :  { %3581 = vmatmul.mubr.msk.f32.vlgmr.msra.gmra.mrb[4].mxu0 %vm190_vm1, %v3577_v55 }
 0x7a8   :  { %3584 = vmatpush3.msra.mxu0 %v88_v35  ;;  %3585 = vmatprep.mubr.msk.f32.mxu0 %vm190_vm1, %v4363_v32 }
 0x7a9   :  { %v4066_v58 = vpop.eup %4065  ;;  %3819 = vmatprep.subr.bf16.mxu0 %v3818_v57 }
 0x7aa   :  { %v4068_v59 = vpop.eup %4067  ;;  %v1135_v45 = vsel %vm274_vm3, %v4066_v58, 0.0 }
 0x7ab   :  { %v4070_v60 = vpop.eup %4069  ;;  %1136 = vadd.xlane.f32.xlu1 %v1135_v45  ;;  %v857_v62 = vmul.f32 %v4068_v59, %v4064_v23  ;;  %v1355_v45 = vrot.slane %v4436_v13, %v1354_v56 }
 0x7ac   :  { %v4072_v43 = vpop.eup %4071  ;;  %v1132_v61 = vsel %vm274_vm3, %v4070_v60, 0.0 }
 0x7ad   :  { %v858_v32 = vmul.f32 %v4072_v43, %v4389_v6 }
 0x7af   :  { %1133 = vadd.xlane.f32.xlu1 %v1132_v61  ;;  %3586 = vmatmul.mubr.msk.f32.vlgmr.msra.gmra.mrb[4].mxu0 %vm190_vm1, %v4361_v31 }
 0x7b0   :  { %3821 = vmatpush3.bf16.msra.mxu0 %v3818_v57  ;;  %3599 = vmatprep.mubr.msk.f32.mxu0 %vm274_vm3, %v857_v62  ;;  %v1349_v57 = vrot.slane %v4436_v13, %v4278_v30 }
 0x7b1   :  { %3602 = vmatprep.subr.mxu0 %v90_v63 }
 0x7b3   :  { %3600 = vmatmul.mubr.msk.f32.vlgmr.msra.gmra.mrb[6].mxu0 %vm274_vm3, %v858_v32 }
 0x7b4   :  { %3603 = vmatpush3.msra.mxu0 %v90_v63 }
 0x7c0   :  { %3997 = vrot.lane.b32.xlu1 %v4301_v46, %s4177_s2 }
 0x838   :  { %v1137_v0 = vpop.xlane.xlu1 %1136 }
 0x83c   :  { %v1134_v1 = vpop.xlane.xlu1 %1133 }
 0x83d   :  { %4073 = vrcp.f32 %v1134_v1  ;;  %v1505_v1 = vld [vmem:[%s4785_s9 + $0x8] sm:$0xff] }
 0x83e   :  { %4075 = vrcp.f32 %v1137_v0  ;;  %v1504_v0 = vld [vmem:[%s4785_s9] sm:$0xff] }
 0x840   :  { %v3998_v31 = vpop.permute.xlu1 %3997 }
 0x841   :  { %v4000_v2 = vunpack.i.h.bf16 %v3998_v31  ;;  %v3999_v3 = vunpack.i.l.bf16 %v3998_v31  ;;  %v3840_v31 = vpack.c.bf16 %v1505_v1, %v1504_v0 }
 0x843   :  { %v3828_v4 = vpack.c.bf16 %v4000_v2, %v3999_v3  ;;  %v1506_v2 = vld [vmem:[%s4785_s9 + $0x10] sm:$0xff]  ;;  %v1507_v3 = vld [vmem:[%s4785_s9 + $0x18] sm:$0xff] }
 0x845   :  { %3829 = vmatprep.subr.bf16.mxu0 %v3828_v4 }
 0x847   :  { %v4074_v5 = vpop.eup %4073 }
 0x848   :  { %v4076_v8 = vpop.eup %4075  ;;  %v1140_v46 = vmul.f32 %v4074_v5, %v4070_v60  ;;  %v1508_v5 = vld [vmem:[%s4785_s9 + $0x20] sm:$0xff] }
 0x849   :  { %v1141_v10 = vmul.f32 %v4076_v8, %v4066_v58  ;;  %v1510_v8 = vld [vmem:[%s4785_s9 + $0x30] sm:$0xff] }
 0x886   :  { %v3601_v6 = vpop.f32.mrb[6].mxu0 }
 0x887   :  { %v937_v7 = vpop.f32.mrb[7].mxu0 }
 0x888   :  { %3604 = vmatprep.mubr.msk.f32.mxu0 %vm190_vm1, %v937_v7 }
 0x889   :  { %3605 = vmatmul.mubr.msk.f32.vlgmr.msra.gmra.mrb[4].mxu0 %vm190_vm1, %v3601_v6  ;;  %v1509_v6 = vld [vmem:[%s4785_s9 + $0x28] sm:$0xff] }
 0x88a   :  { %3831 = vmatpush3.bf16.msra.mxu0 %v3828_v4  ;;  %3618 = vmatprep.mubr.msk.f32.mxu0 %vm274_vm3, %v1140_v46  ;;  %v3844_v4 = vpack.c.bf16 %v1507_v3, %v1506_v2  ;;  %v3848_v7 = vpack.c.bf16 %v1509_v6, %v1508_v5  ;;  %v1511_v46 = vld [vmem:[%s4785_s9 + $0x38] sm:$0xff] }
 0x88b   :  { %3621 = vmatprep.subr.mxu0 %v91_v9 }
 0x88d   :  { %3619 = vmatmul.mubr.msk.f32.vlgmr.msra.gmra.mrb[8].mxu0 %vm274_vm3, %v1141_v10  ;;  %v3332_v10 = vld [vmem:[%s4784_s8] ss:$0 sm:$0xff] }
 0x88e   :  { %3622 = vmatpush3.msra.mxu0 %v91_v9  ;;  %v3852_v9 = vpack.c.bf16 %v1511_v46, %v1510_v8 }
 0x88f   :  { %3841 = vmatprep.subr.bf16.mxu0 %v3840_v31 }
 0x960   :  { %v3620_v11 = vpop.f32.mrb[8].mxu0 }
 0x961   :  { %v1220_v12 = vpop.f32.mrb[9].mxu0 }
 0x962   :  { %3623 = vmatprep.mubr.msk.f32.mxu0 %vm190_vm1, %v1220_v12 }
 0x963   :  { %3624 = vmatmul.mubr.msk.f32.vlgmr.msra.gmra.mrb[4].mxu0 %vm190_vm1, %v3620_v11 }
 0x964   :  { %3843 = vmatpush3.bf16.msra.mxu0 %v3840_v31 }
 0x965   :  { %3845 = vmatprep.subr.bf16.mxu0 %v3844_v4 }
 0x968   :  { %3847 = vmatpush3.bf16.msra.mxu0 %v3844_v4 }
 0x969   :  { %3849 = vmatprep.subr.bf16.mxu0 %v3848_v7 }
 0x96c   :  { %3851 = vmatpush3.bf16.msra.mxu0 %v3848_v7 }
 0x96d   :  { %3853 = vmatprep.subr.bf16.mxu0 %v3852_v9 }
 0x970   :  { %3855 = vmatpush3.bf16.msra.mxu0 %v3852_v9 }
 0xa36   :  { %v3625_v15 = vpop.f32.mrb[4].mxu0 }
 0xa37   :  { %v1317_v16 = vadd.f32 %v3625_v15, %v1315_v14  ;;  %v1301_v17 = vpop.f32.mrb[5].mxu0 }
 0xa38   :  { %v1316_v18 = vadd.f32 %v1315_v14, %v1301_v17 }
 0xa39   :  { %v1319_v19 = vadd.f32 %v1317_v16, %v4286_v40 }
 0xa3a   :  { %v1318_v20 = vadd.f32 %v1316_v18, %v4282_v38  ;;  %v1358_v38 = vld [vmem:[%s4783_s7] sm:$0xff] }
 0xa3b   :  { %v1323_v21 = vsel %vm45_vm0, %v1319_v19, 0.0  ;;  %v3832_v39 = vpack.c.bf16 %v1359_v37, %v1358_v38 }
 0xa3c   :  { %1324 = vadd.xlane.f32.xlu1 %v1323_v21  ;;  %v1320_v22 = vsel %vm45_vm0, %v1318_v20, 0.0 }
 0xa3d   :  { %1321 = vadd.xlane.f32.xlu0 %v1320_v22  ;;  %3833 = vmatprep.subr.bf16.mxu1 %v3832_v39 }
 0xa3e   :  { %3835 = vmatpush3.bf16.msra.mxu1 %v3832_v39 }
 0xa3f   :  { %3837 = vmatprep.subr.bf16.mxu1 %v3836_v44 }
 0xa42   :  { %3839 = vmatpush3.bf16.msra.mxu1 %v3836_v44 }
 0xac9   :  { %v1325_v23 = vpop.xlane.xlu1 %1324 }
 0xaca   :  { %v1327_v24 = vmul.f32 0.03125, %v1325_v23  ;;  %v1322_v25 = vpop.xlane.xlu0 %1321 }
 0xacb   :  { %v1326_v27 = vmul.f32 0.03125, %v1322_v25 }
 0xacc   :  { %v1329_v29 = vsub.f32 %v1319_v19, %v1327_v24 }
 0xacd   :  { %v1328_v33 = vsub.f32 %v1318_v20, %v1326_v27 }
 0xace   :  { %v1331_v36 = vmul.f32 %v1329_v29, %v1329_v29 }
 0xacf   :  { %v1330_v34 = vmul.f32 %v1328_v33, %v1328_v33 }
 0xad0   :  { %v1335_v40 = vsel %vm45_vm0, %v1331_v36, 0.0 }
 0xad1   :  { %v1332_v35 = vsel %vm45_vm0, %v1330_v34, 0.0 }
 0xad2   :  { %1333 = vadd.xlane.f32.xlu0 %v1332_v35 }
 0xad6   :  { %1336 = vadd.xlane.f32.xlu0 %v1335_v40 }
 0xb5f   :  { %v1334_v47 = vpop.xlane.xlu0 %1333 }
 0xb60   :  { %v1338_v48 = vmul.f32 0.03125, %v1334_v47 }
 0xb62   :  { %v1340_v49 = vadd.f32 1e-05, %v1338_v48 }
 0xb63   :  { %v1337_v51 = vpop.xlane.xlu0 %1336 }
 0xb64   :  { %4077 = vrsqrt.f32 %v1340_v49  ;;  %v1339_v53 = vmul.f32 0.03125, %v1337_v51 }
 0xb66   :  { %v1341_v55 = vadd.f32 1e-05, %v1339_v53 }
 0xb68   :  { %4079 = vrsqrt.f32 %v1341_v55 }
 0xb6e   :  { %v4078_v58 = vpop.eup %4077 }
 0xb6f   :  { %v1344_v59 = vmul.f32 %v4078_v58, %v1328_v33 }
 0xb71   :  { %v1350_v60 = vmul.f32 %v1349_v57, %v1344_v59 }
 0xb72   :  { %v4080_v43 = vpop.eup %4079 }
 0xb73   :  { %v1345_v61 = vmul.f32 %v4080_v43, %v1329_v29  ;;  %v4464_v62 = vadd.f32 %v1355_v45, %v1350_v60 }
 0xb75   :  { %v1351_v32 = vmul.f32 %v1349_v57, %v1345_v61  ;;  %3634 = vmatprep.mubr.msk.f32.mxu1 %vm45_vm0, %v4464_v62 }
 0xb77   :  { %v4468_v63 = vadd.f32 %v1355_v45, %v1351_v32 }
 0xb79   :  { %3635 = vmatmul.mubr.msk.f32.vlgmr.msra.gmra.mrb[10].mxu1 %vm45_vm0, %v4468_v63 }
 0xc4c   :  { %v3636_v11 = vpop.f32.mrb[10].mxu1 }
 0xc4d   :  { %v1447_v12 = vadd.f32 %v3636_v11, %v3332_v10  ;;  %v1441_v14 = vpop.f32.mrb[11].mxu1  ;;  %v1514_v11 = vsub.s32 3, %v4269_v26 }
 0xc4e   :  { %v1442_v15 = vadd.f32 %v3332_v10, %v1441_v14 }
 0xc4f   :  { %v1451_v16 = vmul.f32 0.70710677, %v1447_v12  ;;  %v1499_v46 = vmul.f32 0.5, %v1447_v12  ;;  %v1515_v14 = vrot.slane %v4436_v13, %v1514_v11 }
 0xc50   :  { %v1450_v17 = vmul.f32 0.70710677, %v1442_v15  ;;  %v1498_v7 = vmul.f32 0.5, %v1442_v15 }
 0xc51   :  { %v1453_v18 = vand.u32 2147483647, %v1451_v16  ;;  %vm1493_vm4 = vcmp.ge.f32.partialorder %v1451_v16, 0.0 }
 0xc52   :  { %v1452_v19 = vand.u32 2147483647, %v1450_v17  ;;  %vm1492_vm5 = vcmp.ge.f32.partialorder %v1450_v17, 0.0 }
 0xc53   :  { %v1455_v20 = vmul.f32 0.3275911, %v1453_v18  ;;  %v1481_v24 = vsub.f32 0.0, %v1453_v18 }
 0xc54   :  { %v1454_v21 = vmul.f32 0.3275911, %v1452_v19  ;;  %v1480_v25 = vsub.f32 0.0, %v1452_v19 }
 0xc55   :  { %v1457_v22 = vadd.f32 1.0, %v1455_v20  ;;  %v1483_v29 = vmul.f32 %v1481_v24, %v1453_v18 }
 0xc56   :  { %v1456_v23 = vadd.f32 1.0, %v1454_v21  ;;  %v1482_v35 = vmul.f32 %v1480_v25, %v1452_v19 }
 0xc57   :  { %4081 = vrcp.f32 %v1457_v22  ;;  %v1486_v38 = vmul.f32 1.442695, %v1483_v29 }
 0xc58   :  { %4083 = vrcp.f32 %v1456_v23  ;;  %v1484_v41 = vmul.f32 1.442695, %v1482_v35 }
 0xc59   :  { %4085 = vpow2.f32 %v1486_v38  ;;  %v3344_v38 = vld [vmem:[%s4779_s3 + $0x30] sm:$0xff] }
 0xc5a   :  { %4087 = vpow2.f32 %v1484_v41 }
 0xc61   :  { %v4082_v27 = vpop.eup %4081 }
 0xc62   :  { %v4084_v33 = vpop.eup %4083  ;;  %v1463_v34 = vmul.f32 1.0614054, %v4082_v27 }
 0xc63   :  { %v1462_v36 = vmul.f32 1.0614054, %v4084_v33  ;;  %v4086_v60 = vpop.eup %4085 }
 0xc64   :  { %v1465_v40 = vadd.f32 -1.4531521, %v1463_v34  ;;  %v4088_v61 = vpop.eup %4087 }
 0xc65   :  { %v1464_v37 = vadd.f32 -1.4531521, %v1462_v36  ;;  %v3343_v36 = vld [vmem:[%s4779_s3 + $0x28] sm:$0xff] }
 0xc66   :  { %v1467_v39 = vmul.f32 %v4082_v27, %v1465_v40 }
 0xc67   :  { %v1466_v42 = vmul.f32 %v4084_v33, %v1464_v37  ;;  %v3345_v37 = vld [vmem:[%s4779_s3 + $0x38] sm:$0xff] }
 0xc68   :  { %v1469_v44 = vadd.f32 1.4214138, %v1467_v39  ;;  %v3860_v39 = vpack.c.bf16 %v3345_v37, %v3344_v38 }
 0xc69   :  { %v1468_v47 = vadd.f32 1.4214138, %v1466_v42 }
 0xc6a   :  { %v1471_v48 = vmul.f32 %v4082_v27, %v1469_v44 }
 0xc6b   :  { %v1470_v49 = vmul.f32 %v4084_v33, %v1468_v47 }
 0xc6c   :  { %v1473_v51 = vadd.f32 -0.28449672, %v1471_v48 }
 0xc6d   :  { %v1472_v53 = vadd.f32 -0.28449672, %v1470_v49 }
 0xc6e   :  { %v1475_v55 = vmul.f32 %v4082_v27, %v1473_v51  ;;  %v1628_v51 = vsub.s32 4, %v4269_v26 }
 0xc6f   :  { %v1474_v57 = vmul.f32 %v4084_v33, %v1472_v53  ;;  %v1634_v53 = vsub.s32 5, %v4269_v26 }
 0xc70   :  { %v1477_v58 = vadd.f32 0.2548296, %v1475_v55  ;;  %v1629_v55 = vrot.slane %v4436_v13, %v1628_v51 }
 0xc71   :  { %v1476_v59 = vadd.f32 0.2548296, %v1474_v57 }
 0xc72   :  { %v1479_v45 = vmul.f32 %v4082_v27, %v1477_v58 }
 0xc73   :  { %v1478_v43 = vmul.f32 %v4084_v33, %v1476_v59  ;;  %v1635_v59 = vrot.slane %v4436_v13, %v1634_v53 }
 0xc74   :  { %v1489_v32 = vmul.f32 %v4086_v60, %v1479_v45 }
 0xc75   :  { %v1488_v0 = vmul.f32 %v4088_v61, %v1478_v43 }
 0xc76   :  { %v1491_v1 = vsub.f32 1.0, %v1489_v32 }
 0xc77   :  { %v1490_v31 = vsub.f32 1.0, %v1488_v0 }
 0xc78   :  { %v1495_v2 = vsub.f32 0.0, %v1491_v1 }
 0xc79   :  { %v1494_v3 = vsub.f32 0.0, %v1490_v31 }
 0xc7a   :  { %v1497_v4 = vsel %vm1493_vm4, %v1491_v1, %v1495_v2  ;;  %v3347_v1 = vld [vmem:[%s4780_s4 + $0x1] ss:$0 sm:$0xff] }
 0xc7b   :  { %v1501_v5 = vadd.f32 1.0, %v1497_v4  ;;  %v1496_v6 = vsel %vm1492_vm5, %v1490_v31, %v1494_v3 }
 0xc7c   :  { %v1500_v8 = vadd.f32 1.0, %v1496_v6 }
 0xc7d   :  { %v1503_v10 = vmul.f32 %v1501_v5, %v1499_v46 }
 0xc7e   :  { %v1502_v9 = vmul.f32 %v1500_v8, %v1498_v7 }
 0xc80   :  { %3653 = vmatprep.mubr.msk.f32.mxu0 %vm1516_vm6, %v1502_v9 }
 0xc81   :  { %3654 = vmatmul.mubr.msk.f32.vlgmr.msra.gmra.mrb[10].mxu0 %vm1516_vm6, %v1503_v10 }
 0xd54   :  { %v3655_v16 = vpop.f32.mrb[10].mxu0 }
 0xd55   :  { %v1589_v17 = vpop.f32.mrb[11].mxu0  ;;  %v1595_v18 = vadd.f32 %v3655_v16, %v1515_v14 }
 0xd56   :  { %v1590_v19 = vadd.f32 %v1589_v17, %v1515_v14 }
 0xd57   :  { %v1599_v20 = vadd.f32 %v1595_v18, %v4468_v63  ;;  %v3342_v63 = vld [vmem:[%s4779_s3 + $0x20] sm:$0xff] }
 0xd58   :  { %v1598_v15 = vadd.f32 %v1590_v19, %v4464_v62  ;;  %v3856_v40 = vpack.c.bf16 %v3343_v36, %v3342_v63 }
 0xd59   :  { %v1603_v21 = vsel %vm45_vm0, %v1599_v20, 0.0 }
 0xd5a   :  { %v1600_v12 = vsel %vm45_vm0, %v1598_v15, 0.0  ;;  %3857 = vmatprep.subr.bf16.mxu1 %v3856_v40 }
 0xd5b   :  { %1601 = vadd.xlane.f32.xlu0 %v1600_v12  ;;  %3859 = vmatpush3.bf16.msra.mxu1 %v3856_v40 }
 0xd5c   :  { %3861 = vmatprep.subr.bf16.mxu1 %v3860_v39 }
 0xd5f   :  { %1604 = vadd.xlane.f32.xlu0 %v1603_v21  ;;  %3863 = vmatpush3.bf16.msra.mxu1 %v3860_v39 }
 0xde8   :  { %v1602_v22 = vpop.xlane.xlu0 %1601 }
 0xde9   :  { %v1606_v23 = vmul.f32 0.03125, %v1602_v22 }
 0xdeb   :  { %v1608_v24 = vsub.f32 %v1598_v15, %v1606_v23 }
 0xdec   :  { %v1605_v25 = vpop.xlane.xlu0 %1604 }
 0xded   :  { %v1607_v27 = vmul.f32 0.03125, %v1605_v25  ;;  %v1610_v29 = vmul.f32 %v1608_v24, %v1608_v24 }
 0xdef   :  { %v1609_v33 = vsub.f32 %v1599_v20, %v1607_v27  ;;  %v1612_v34 = vsel %vm45_vm0, %v1610_v29, 0.0 }
 0xdf0   :  { %1613 = vadd.xlane.f32.xlu0 %v1612_v34 }
 0xdf1   :  { %v1611_v35 = vmul.f32 %v1609_v33, %v1609_v33 }
 0xdf3   :  { %v1615_v62 = vsel %vm45_vm0, %v1611_v35, 0.0 }
 0xdf4   :  { %1616 = vadd.xlane.f32.xlu1 %v1615_v62 }
 0xe7d   :  { %v1614_v41 = vpop.xlane.xlu0 %1613 }
 0xe7e   :  { %v1618_v42 = vmul.f32 0.03125, %v1614_v41 }
 0xe80   :  { %v1620_v44 = vadd.f32 1e-05, %v1618_v42 }
 0xe81   :  { %v1617_v47 = vpop.xlane.xlu1 %1616 }
 0xe82   :  { %4089 = vrsqrt.f32 %v1620_v44  ;;  %v1619_v48 = vmul.f32 0.03125, %v1617_v47 }
 0xe84   :  { %v1621_v49 = vadd.f32 1e-05, %v1619_v48 }
 0xe86   :  { %4091 = vrsqrt.f32 %v1621_v49 }
 0xe8c   :  { %v4090_v57 = vpop.eup %4089 }
 0xe8d   :  { %v1624_v58 = vmul.f32 %v4090_v57, %v1608_v24 }
 0xe8f   :  { %v1630_v45 = vmul.f32 %v1629_v55, %v1624_v58 }
 0xe90   :  { %v4092_v60 = vpop.eup %4091 }
 0xe91   :  { %v1625_v43 = vmul.f32 %v4092_v60, %v1609_v33  ;;  %v4531_v61 = vadd.f32 %v1635_v59, %v1630_v45 }
 0xe93   :  { %v1631_v32 = vmul.f32 %v1629_v55, %v1625_v43  ;;  %3664 = vmatprep.mubr.msk.f32.mxu1 %vm45_vm0, %v4531_v61 }
 0xe95   :  { %v4535_v0 = vadd.f32 %v1635_v59, %v1631_v32 }
 0xe97   :  { %3665 = vmatmul.mubr.msk.f32.vlgmr.msra.gmra.mrb[12].mxu1 %vm45_vm0, %v4535_v0 }
 0xf6a   :  { %v3666_v31 = vpop.f32.mrb[12].mxu1 }
 0xf6b   :  { %v4542_v13 = vadd.f32 %v3666_v31, %v3347_v1  ;;  %v1730_v2 = vpop.f32.mrb[13].mxu1 }
 0xf6c   :  { %v4544_v3 = vadd.f32 %v3347_v1, %v1730_v2  ;;  %v4609_v2 = vld [vmem:[%s4777_s1] sm:$0xff] }
 0xf6e   :  { %3671 = vmatprep.mubr.msk.f32.mxu1 %vm190_vm1, %v4544_v3  ;;  %v4550_v4 = vpack.i.bf16 %v4542_v13, %v4544_v3 }
 0xf70   :  { %4007 = vrot.lane.b32.xlu1 %v4550_v4, %s4168_s18  ;;  %4002 = vrot.lane.b32.xlu0 %v4550_v4, %s4167_s17 }
 0xf74   :  { %1937 = vrot.lane.b32.xlu1 %v4544_v3, %s4169_s19  ;;  %4012 = vrot.lane.b32.xlu0 %v4550_v4, %s4172_s25 }
 0xf78   :  { %1939 = vrot.lane.b32.xlu1 %v4542_v13, %s4169_s19  ;;  %2301 = vrot.lane.b32.xlu0 %v4542_v13, %s4170_s20 }
 0xf7c   :  { %2299 = vrot.lane.b32.xlu1 %v4544_v3, %s4170_s20 }
 0xfe2   :  { %v4008_v5 = vpop.permute.xlu1 %4007  ;;  %v4003_v6 = vpop.permute.xlu0 %4002 }
 0xfe3   :  { %v4010_v7 = vunpack.i.h.bf16 %v4008_v5  ;;  %v4009_v8 = vunpack.i.l.bf16 %v4008_v5  ;;  %v4005_v46 = vunpack.i.h.bf16 %v4003_v6  ;;  %v4004_v9 = vunpack.i.l.bf16 %v4003_v6 }
 0xfe5   :  { %v3864_v10 = vpack.c.bf16 %v4005_v46, %v4004_v9  ;;  %v3874_v14 = vpack.c.bf16 %v4010_v7, %v4009_v8 }
 0xfe6   :  { %v4013_v16 = vpop.permute.xlu0 %4012  ;;  %v1938_v17 = vpop.permute.xlu1 %1937 }
 0xfe7   :  { %3866 = vmatprep.subr.msk.bf16.mxu1 %vm4315_vm2, %v3864_v10  ;;  %v4015_v18 = vunpack.i.h.bf16 %v4013_v16  ;;  %v4014_v19 = vunpack.i.l.bf16 %v4013_v16 }
 0xfe8   :  { %3869 = vmatpush3.bf16.xpose.msk.msra.mxu1 %vm4315_vm2, %v3864_v10 }
 0xfe9   :  { %3876 = vmatprep.subr.msk.bf16.mxu1 %vm4315_vm2, %v3874_v14  ;;  %v3884_v15 = vpack.c.bf16 %v4015_v18, %v4014_v19 }
 0xfea   :  { %v1940_v12 = vpop.permute.xlu1 %1939  ;;  %v2302_v21 = vpop.permute.xlu0 %2301 }
 0xfee   :  { %v2300_v20 = vpop.permute.xlu1 %2299 }
 0xfef   :  { %3672 = vmatmul.mubr.msk.f32.vlgmr.msra.gmra.mrb[14].mxu1 %vm190_vm1, %v4542_v13 }
 0xff0   :  { %3879 = vmatpush3.bf16.xpose.msk.msra.mxu1 %vm4315_vm2, %v3874_v14  ;;  %3685 = vmatprep.mubr.msk.f32.mxu1 %vm190_vm1, %v1938_v17 }
 0xff1   :  { %3886 = vmatprep.subr.msk.bf16.mxu1 %vm4315_vm2, %v3884_v15 }
 0xff7   :  { %3686 = vmatmul.mubr.msk.f32.vlgmr.msra.gmra.mrb[16].mxu1 %vm190_vm1, %v1940_v12 }
 0xff8   :  { %3889 = vmatpush3.bf16.xpose.msk.msra.mxu1 %vm4315_vm2, %v3884_v15  ;;  %3709 = vmatprep.mubr.msk.f32.mxu1 %vm190_vm1, %v2300_v20 }
 0xfff   :  { %3710 = vmatmul.mubr.msk.f32.vlgmr.msra.gmra.mrb[18].mxu1 %vm190_vm1, %v2302_v21 }
0x10c2   :  { %v3673_v22 = vpop.f32.mrb[14].mxu1 }
0x10c3   :  { %v1825_v23 = vadd.f32 %v3673_v22, %v4333_v54  ;;  %v1819_v24 = vpop.f32.mrb[15].mxu1 }
0x10c4   :  { %v1820_v25 = vadd.f32 %v1819_v24, %v4328_v52 }
0x10c5   :  { %v1831_v27 = vsel %vm274_vm3, %v1825_v23, -inf }
0x10c6   :  { %1832 = vmax.xlane.f32.xlu0 %v1831_v27  ;;  %v1828_v29 = vsel %vm274_vm3, %v1820_v25, -inf }
0x10c7   :  { %1829 = vmax.xlane.f32.xlu1 %v1828_v29 }
0x10ca   :  { %v3687_v33 = vpop.f32.mrb[16].mxu1 }
0x10cb   :  { %v2019_v34 = vpop.f32.mrb[17].mxu1  ;;  %v2025_v62 = vadd.f32 %v3687_v33, %v4333_v54 }
0x10cc   :  { %v2020_v35 = vadd.f32 %v2019_v34, %v4328_v52 }
0x10cd   :  { %v2031_v40 = vsel %vm274_vm3, %v2025_v62, -inf }
0x10ce   :  { %v2028_v63 = vsel %vm274_vm3, %v2020_v35, -inf }
0x10cf   :  { %2029 = vmax.xlane.f32.xlu0 %v2028_v63 }
0x10d2   :  { %v3711_v36 = vpop.f32.mrb[18].mxu1 }
0x10d3   :  { %v2381_v38 = vpop.f32.mrb[19].mxu1  ;;  %2032 = vmax.xlane.f32.xlu0 %v2031_v40 }
0x10d4   :  { %v2382_v5 = vadd.f32 %v4609_v2, %v2381_v38 }
0x10d6   :  { %v2390_v6 = vsel %vm274_vm3, %v2382_v5, -inf }
0x1153   :  { %v1833_v37 = vpop.xlane.xlu0 %1832 }
0x1154   :  { %v1835_v39 = vsub.f32 %v1825_v23, %v1833_v37  ;;  %v1830_v41 = vpop.xlane.xlu1 %1829 }
0x1155   :  { %v1834_v42 = vsub.f32 %v1820_v25, %v1830_v41 }
0x1156   :  { %v1838_v44 = vmul.f32 1.442695, %v1835_v39 }
0x1157   :  { %v1836_v47 = vmul.f32 1.442695, %v1834_v42 }
0x1158   :  { %4093 = vpow2.f32 %v1838_v44 }
0x1159   :  { %4095 = vpow2.f32 %v1836_v47 }
0x115c   :  { %v2030_v48 = vpop.xlane.xlu0 %2029 }
0x115d   :  { %v2034_v52 = vsub.f32 %v2020_v35, %v2030_v48 }
0x115f   :  { %v2036_v49 = vmul.f32 1.442695, %v2034_v52 }
0x1160   :  { %v2033_v54 = vpop.xlane.xlu0 %2032 }
0x1161   :  { %4097 = vpow2.f32 %v2036_v49  ;;  %v2035_v55 = vsub.f32 %v2025_v62, %v2033_v54  ;;  %v3339_v49 = vld [vmem:[%s4781_s5 + $0x28] sm:$0xff]  ;;  %v3338_v54 = vld [vmem:[%s4781_s5 + $0x20] sm:$0xff] }
0x1162   :  { %v4094_v57 = vpop.eup %4093 }
0x1163   :  { %v4096_v58 = vpop.eup %4095  ;;  %v2038_v59 = vmul.f32 1.442695, %v2035_v55  ;;  %v1843_v45 = vsel %vm274_vm3, %v4094_v57, 0.0 }
0x1164   :  { %1844 = vadd.xlane.f32.xlu0 %v1843_v45  ;;  %v1840_v60 = vsel %vm274_vm3, %v4096_v58, 0.0 }
0x1165   :  { %4099 = vpow2.f32 %v2038_v59  ;;  %1841 = vadd.xlane.f32.xlu1 %v1840_v60 }
0x116b   :  { %v4098_v43 = vpop.eup %4097 }
0x116c   :  { %v2040_v32 = vsel %vm274_vm3, %v4098_v43, 0.0 }
0x116d   :  { %2041 = vadd.xlane.f32.xlu1 %v2040_v32 }
0x116f   :  { %v4100_v1 = vpop.eup %4099 }
0x1170   :  { %v2043_v31 = vsel %vm274_vm3, %v4100_v1, 0.0 }
0x1171   :  { %2044 = vadd.xlane.f32.xlu0 %v2043_v31 }
0x117e   :  { %4017 = vrot.lane.b32.xlu1 %v4550_v4, %s4171_s0 }
0x1182   :  { %4027 = vrot.lane.b32.xlu1 %v4550_v4, %s4173_s26 }
0x1186   :  { %2582 = vrot.lane.b32.xlu1 %v4544_v3, %s4174_s27  ;;  %v4616_v3 = vld [vmem:[%s4777_s1 + $0x8] sm:$0xff] }
0x1187   :  { %4022 = vrot.lane.b32.xlu0 %v4550_v4, %s4175_s28  ;;  %v2387_v7 = vadd.f32 %v4616_v3, %v3711_v36 }
0x1189   :  { %v2393_v8 = vsel %vm274_vm3, %v2387_v7, -inf }
0x118a   :  { %2584 = vrot.lane.b32.xlu1 %v4542_v13, %s4174_s27 }
0x11a6   :  { %2391 = vmax.xlane.f32.xlu0 %v2390_v6 }
0x11ae   :  { %2394 = vmax.xlane.f32.xlu1 %v2393_v8 }
0x11f1   :  { %v1845_v46 = vpop.xlane.xlu0 %1844 }
0x11f2   :  { %v1842_v13 = vpop.xlane.xlu1 %1841 }
0x11f3   :  { %4101 = vrcp.f32 %v1842_v13 }
0x11f4   :  { %4103 = vrcp.f32 %v1845_v46 }
0x11fa   :  { %v2042_v9 = vpop.xlane.xlu1 %2041 }
0x11fb   :  { %4105 = vrcp.f32 %v2042_v9 }
0x11fd   :  { %v4102_v10 = vpop.eup %4101 }
0x11fe   :  { %v2045_v14 = vpop.xlane.xlu0 %2044  ;;  %v4018_v16 = vpop.permute.xlu1 %4017  ;;  %v1848_v17 = vmul.f32 %v4102_v10, %v4096_v58 }
0x11ff   :  { %4107 = vrcp.f32 %v2045_v14  ;;  %v4020_v18 = vunpack.i.h.bf16 %v4018_v16  ;;  %v4019_v19 = vunpack.i.l.bf16 %v4018_v16  ;;  %v4104_v12 = vpop.eup %4103 }
0x1200   :  { %3678 = vmatprep.mubr.msk.f32.mxu0 %vm274_vm3, %v1848_v17  ;;  %v1849_v29 = vmul.f32 %v4104_v12, %v4094_v57 }
0x1201   :  { %v3870_v15 = vpack.c.bf16 %v4020_v18, %v4019_v19 }
0x1202   :  { %v4023_v20 = vpop.permute.xlu0 %4022  ;;  %v4028_v21 = vpop.permute.xlu1 %4027 }
0x1203   :  { %v4025_v22 = vunpack.i.h.bf16 %v4023_v20  ;;  %v4024_v23 = vunpack.i.l.bf16 %v4023_v20  ;;  %v4030_v24 = vunpack.i.h.bf16 %v4028_v21  ;;  %v4029_v25 = vunpack.i.l.bf16 %v4028_v21  ;;  %3871 = vmatprep.subr.bf16.mxu0 %v3870_v15 }
0x1204   :  { %3873 = vmatpush3.bf16.msra.mxu0 %v3870_v15 }
0x1205   :  { %v4106_v27 = vpop.eup %4105  ;;  %v3880_v33 = vpack.c.bf16 %v4025_v22, %v4024_v23  ;;  %v3894_v34 = vpack.c.bf16 %v4030_v24, %v4029_v25 }
0x1206   :  { %v2583_v35 = vpop.permute.xlu1 %2582  ;;  %v2048_v62 = vmul.f32 %v4106_v27, %v4098_v43 }
0x1207   :  { %3679 = vmatmul.mubr.msk.f32.vlgmr.msra.gmra.mrb[12].mxu0 %vm274_vm3, %v1849_v29  ;;  %3881 = vmatprep.subr.bf16.mxu0 %v3880_v33 }
0x1208   :  { %3896 = vmatprep.subr.msk.bf16.mxu1 %vm4315_vm2, %v3894_v34  ;;  %3728 = vmatprep.mubr.msk.f32.mxu1 %vm190_vm1, %v2583_v35 }
0x1209   :  { %v4108_v63 = vpop.eup %4107  ;;  %3883 = vmatpush3.bf16.msra.mxu0 %v3880_v33  ;;  %3692 = vmatprep.mubr.msk.f32.mxu0 %vm274_vm3, %v2048_v62 }
0x120a   :  { %v2049_v36 = vmul.f32 %v4108_v63, %v4100_v1  ;;  %3899 = vmatpush3.bf16.xpose.msk.msra.mxu1 %vm4315_vm2, %v3894_v34  ;;  %v2585_v40 = vpop.permute.xlu1 %2584  ;;  %3695 = vmatprep.subr.mxu0 %v3339_v49  ;;  %v3341_v63 = vld [vmem:[%s4781_s5 + $0x38] sm:$0xff] }
0x120c   :  { %3693 = vmatmul.mubr.msk.f32.vlgmr.msra.gmra.mrb[14].mxu0 %vm274_vm3, %v2049_v36 }
0x120d   :  { %3696 = vmatpush3.msra.mxu0 %v3339_v49 }
0x120e   :  { %3700 = vmatprep.subr.mxu0 %v3338_v54 }
0x1211   :  { %3729 = vmatmul.mubr.msk.f32.vlgmr.msra.gmra.mrb[20].mxu1 %vm190_vm1, %v2585_v40 }
0x1233   :  { %v2392_v38 = vpop.xlane.xlu0 %2391 }
0x1234   :  { %v2396_v37 = vsub.f32 %v2382_v5, %v2392_v38 }
0x1236   :  { %v2398_v42 = vmul.f32 1.442695, %v2396_v37 }
0x123b   :  { %v2395_v39 = vpop.xlane.xlu1 %2394 }
0x123c   :  { %v2397_v41 = vsub.f32 %v2387_v7, %v2395_v39 }
0x123e   :  { %v2400_v44 = vmul.f32 1.442695, %v2397_v41  ;;  %v4669_v41 = vld [vmem:[%s4782_s6 + $0x8] sm:$0x3f] }
0x1240   :  { %4109 = vpow2.f32 %v2400_v44 }
0x1241   :  { %4111 = vpow2.f32 %v2398_v42  ;;  %v2868_v42 = vrot.slane %v4669_v41, %v4272_v28 }
0x124a   :  { %v4110_v47 = vpop.eup %4109 }
0x124b   :  { %v2405_v48 = vsel %vm274_vm3, %v4110_v47, 0.0  ;;  %v4112_v52 = vpop.eup %4111 }
0x124c   :  { %2406 = vadd.xlane.f32.xlu0 %v2405_v48  ;;  %v2402_v50 = vsel %vm274_vm3, %v4112_v52, 0.0 }
0x1250   :  { %2403 = vadd.xlane.f32.xlu0 %v2402_v50 }
0x1266   :  { %4032 = vrot.lane.b32.xlu0 %v4550_v4, %s4176_s29 }
0x12d9   :  { %v2407_v55 = vpop.xlane.xlu0 %2406 }
0x12da   :  { %v3680_v57 = vpop.f32.mrb[12].mxu0 }
0x12db   :  { %v1928_v58 = vpop.f32.mrb[13].mxu0 }
0x12dd   :  { %v2404_v59 = vpop.xlane.xlu0 %2403 }
0x12de   :  { %4113 = vrcp.f32 %v2404_v59 }
0x12df   :  { %4115 = vrcp.f32 %v2407_v55  ;;  %v3694_v45 = vpop.f32.mrb[14].mxu0 }
0x12e0   :  { %v2128_v60 = vpop.f32.mrb[15].mxu0 }
0x12e1   :  { %v4033_v43 = vpop.permute.xlu0 %4032  ;;  %3697 = vmatprep.mubr.msk.f32.mxu0 %vm190_vm1, %v2128_v60 }
0x12e2   :  { %v4035_v32 = vunpack.i.h.bf16 %v4033_v43  ;;  %v4034_v1 = vunpack.i.l.bf16 %v4033_v43  ;;  %3698 = vmatmul.mubr.msk.f32.vlgmr.msra.gmra.mrb[16].mxu0 %vm190_vm1, %v3694_v45 }
0x12e3   :  { %3702 = vmatprep.mubr.msk.f32.mxu0 %vm190_vm1, %v1928_v58  ;;  %3701 = vmatpush3.msra.mxu0 %v3338_v54 }
0x12e4   :  { %v3890_v31 = vpack.c.bf16 %v4035_v32, %v4034_v1  ;;  %v3730_v5 = vpop.f32.mrb[20].mxu1 }
0x12e5   :  { %v2664_v6 = vpop.f32.mrb[21].mxu1  ;;  %v2670_v13 = vadd.f32 %v4616_v3, %v3730_v5 }
0x12e6   :  { %v2665_v7 = vadd.f32 %v4609_v2, %v2664_v6  ;;  %3891 = vmatprep.subr.bf16.mxu0 %v3890_v31  ;;  %v3340_v2 = vld [vmem:[%s4781_s5 + $0x30] sm:$0xff] }
0x12e7   :  { %v2676_v16 = vsel %vm274_vm3, %v2670_v13, -inf  ;;  %v3384_v6 = vld [vmem:[%s4783_s7 + $0x30] sm:$0xff] }
0x12e8   :  { %v4114_v8 = vpop.eup %4113  ;;  %v2673_v46 = vsel %vm274_vm3, %v2665_v7, -inf }
0x12e9   :  { %v4116_v9 = vpop.eup %4115  ;;  %2674 = vmax.xlane.f32.xlu1 %v2673_v46  ;;  %v2410_v10 = vmul.f32 %v4114_v8, %v4112_v52 }
0x12ea   :  { %3703 = vmatmul.mubr.msk.f32.vlgmr.msra.gmra.mrb[16].mxu0 %vm190_vm1, %v3680_v57  ;;  %v2411_v14 = vmul.f32 %v4116_v9, %v4110_v47 }
0x12eb   :  { %3893 = vmatpush3.bf16.msra.mxu0 %v3890_v31  ;;  %3716 = vmatprep.mubr.msk.f32.mxu0 %vm274_vm3, %v2410_v10  ;;  %v3383_v31 = vld [vmem:[%s4783_s7 + $0x28] sm:$0xff] }
0x12ec   :  { %3719 = vmatprep.subr.mxu0 %v3340_v2 }
0x12ed   :  { %2677 = vmax.xlane.f32.xlu1 %v2676_v16 }
0x12ee   :  { %3717 = vmatmul.mubr.msk.f32.vlgmr.msra.gmra.mrb[18].mxu0 %vm274_vm3, %v2411_v14 }
0x12ef   :  { %3720 = vmatpush3.msra.mxu0 %v3340_v2  ;;  %v2902_v2 = vrot.slane %v4669_v41, %v4278_v30  ;;  %v3390_v30 = vld [vmem:[%s4785_s9 + $0x40] sm:$0xff] }
0x1376   :  { %v2675_v3 = vpop.xlane.xlu1 %2674 }
0x1377   :  { %v2679_v17 = vsub.f32 %v2665_v7, %v2675_v3  ;;  %v3385_v7 = vld [vmem:[%s4783_s7 + $0x38] sm:$0xff] }
0x1378   :  { %v3908_v8 = vpack.c.bf16 %v3385_v7, %v3384_v6 }
0x1379   :  { %v2681_v15 = vmul.f32 1.442695, %v2679_v17 }
0x137a   :  { %v2678_v18 = vpop.xlane.xlu1 %2677 }
0x137b   :  { %v2680_v19 = vsub.f32 %v2670_v13, %v2678_v18  ;;  %v2908_v18 = vrot.slane %v4669_v41, %v1354_v56  ;;  %v3391_v56 = vld [vmem:[%s4785_s9 + $0x48] sm:$0xff] }
0x137d   :  { %v2683_v12 = vmul.f32 1.442695, %v2680_v19 }
0x137f   :  { %4117 = vpow2.f32 %v2683_v12 }
0x1380   :  { %4119 = vpow2.f32 %v2681_v15 }
0x1389   :  { %v4118_v20 = vpop.eup %4117 }
0x138a   :  { %v2688_v21 = vsel %vm274_vm3, %v4118_v20, 0.0  ;;  %v4120_v22 = vpop.eup %4119 }
0x138b   :  { %2689 = vadd.xlane.f32.xlu1 %v2688_v21  ;;  %v2685_v23 = vsel %vm274_vm3, %v4120_v22, 0.0 }
0x138f   :  { %2686 = vadd.xlane.f32.xlu1 %v2685_v23  ;;  %v3912_v23 = vpack.c.bf16 %v3391_v56, %v3390_v30 }
0x13a0   :  { %4037 = vrot.lane.b32.xlu1 %v4550_v4, %s4177_s2 }
0x13c1   :  { %v3718_v24 = vpop.f32.mrb[18].mxu0 }
0x13c2   :  { %v2490_v25 = vpop.f32.mrb[19].mxu0 }
0x13c3   :  { %3721 = vmatprep.mubr.msk.f32.mxu0 %vm190_vm1, %v2490_v25  ;;  %v3393_v25 = vld [vmem:[%s4785_s9 + $0x58] sm:$0xff] }
0x13c4   :  { %3722 = vmatmul.mubr.msk.f32.vlgmr.msra.gmra.mrb[16].mxu0 %vm190_vm1, %v3718_v24  ;;  %v3392_v24 = vld [vmem:[%s4785_s9 + $0x50] sm:$0xff] }
0x1418   :  { %v2690_v27 = vpop.xlane.xlu1 %2689 }
0x1419   :  { %4121 = vrcp.f32 %v2690_v27  ;;  %v3916_v27 = vpack.c.bf16 %v3393_v25, %v3392_v24 }
0x141c   :  { %v2687_v29 = vpop.xlane.xlu1 %2686 }
0x141d   :  { %4123 = vrcp.f32 %v2687_v29  ;;  %v3394_v29 = vld [vmem:[%s4785_s9 + $0x60] sm:$0xff] }
0x1420   :  { %v4038_v33 = vpop.permute.xlu1 %4037 }
0x1421   :  { %v4040_v34 = vunpack.i.h.bf16 %v4038_v33  ;;  %v4039_v35 = vunpack.i.l.bf16 %v4038_v33  ;;  %v3395_v33 = vld [vmem:[%s4785_s9 + $0x68] sm:$0xff] }
0x1423   :  { %v3900_v62 = vpack.c.bf16 %v4040_v34, %v4039_v35  ;;  %v4122_v4 = vpop.eup %4121  ;;  %v3920_v34 = vpack.c.bf16 %v3395_v33, %v3394_v29  ;;  %v3396_v35 = vld [vmem:[%s4785_s9 + $0x70] sm:$0xff] }
0x1424   :  { %v2694_v38 = vmul.f32 %v4122_v4, %v4118_v20  ;;  %v3387_v4 = vld [vmem:[%s4784_s8 + $0x1] ss:$0 sm:$0xff] }
0x1425   :  { %3901 = vmatprep.subr.bf16.mxu0 %v3900_v62 }
0x1426   :  { %3903 = vmatpush3.bf16.msra.mxu0 %v3900_v62  ;;  %v3397_v62 = vld [vmem:[%s4785_s9 + $0x78] sm:$0xff] }
0x1427   :  { %v4124_v36 = vpop.eup %4123  ;;  %3738 = vmatprep.subr.mxu0 %v3341_v63 }
0x1428   :  { %v2693_v40 = vmul.f32 %v4124_v36, %v4120_v22 }
0x142a   :  { %3735 = vmatprep.mubr.msk.f32.mxu0 %vm274_vm3, %v2693_v40 }
0x142b   :  { %3736 = vmatmul.mubr.msk.f32.vlgmr.msra.gmra.mrb[20].mxu0 %vm274_vm3, %v2694_v38 }
0x142c   :  { %3739 = vmatpush3.msra.mxu0 %v3341_v63  ;;  %v3924_v63 = vpack.c.bf16 %v3397_v62, %v3396_v35  ;;  %v3071_v62 = vrot.slane %v4669_v41, %v1514_v11 }
0x142d   :  { %3913 = vmatprep.subr.bf16.mxu0 %v3912_v23 }
0x14fe   :  { %v3737_v37 = vpop.f32.mrb[20].mxu0 }
0x14ff   :  { %v2773_v39 = vpop.f32.mrb[21].mxu0 }
0x1500   :  { %3740 = vmatprep.mubr.msk.f32.mxu0 %vm190_vm1, %v2773_v39 }
0x1501   :  { %3741 = vmatmul.mubr.msk.f32.vlgmr.msra.gmra.mrb[16].mxu0 %vm190_vm1, %v3737_v37 }
0x1502   :  { %3915 = vmatpush3.bf16.msra.mxu0 %v3912_v23 }
0x1503   :  { %3917 = vmatprep.subr.bf16.mxu0 %v3916_v27 }
0x1506   :  { %3919 = vmatpush3.bf16.msra.mxu0 %v3916_v27 }
0x1507   :  { %3921 = vmatprep.subr.bf16.mxu0 %v3920_v34 }
0x150a   :  { %3923 = vmatpush3.bf16.msra.mxu0 %v3920_v34 }
0x150b   :  { %3925 = vmatprep.subr.bf16.mxu0 %v3924_v63 }
0x150e   :  { %3927 = vmatpush3.bf16.msra.mxu0 %v3924_v63 }
0x15d4   :  { %v3742_v44 = vpop.f32.mrb[16].mxu0 }
0x15d5   :  { %v2870_v47 = vadd.f32 %v3742_v44, %v2868_v42  ;;  %v2854_v48 = vpop.f32.mrb[17].mxu0 }
0x15d6   :  { %v2869_v52 = vadd.f32 %v2868_v42, %v2854_v48 }
0x15d7   :  { %v2872_v50 = vadd.f32 %v2870_v47, %v4535_v0 }
0x15d8   :  { %v2871_v49 = vadd.f32 %v2869_v52, %v4531_v61  ;;  %v3382_v61 = vld [vmem:[%s4783_s7 + $0x20] sm:$0xff]  ;;  %s3289_s7 = sshll.u32 %s4181_s22, 4  ;;  %s3290_s7 = int_to_ptr.vmem [resolvable:$true] %s3289_s7 }
0x15d9   :  { %v2876_v54 = vsel %vm45_vm0, %v2872_v50, 0.0  ;;  %v3904_v5 = vpack.c.bf16 %v3383_v31, %v3382_v61  ;;  %s4143_s23 = scalar_lea.vmem %s3290_s7, 32  ;;  %p4148_p1 = scmp.lt.s32.totalorder %s3290_s7, %s3290_s7 }
0x15da   :  { %2877 = vadd.xlane.f32.xlu1 %v2876_v54  ;;  %v2873_v55 = vsel %vm45_vm0, %v2871_v49, 0.0  ;;  %p4144_p0 = scmp.ne.s32.totalorder %s3290_s7, %s4143_s23  ;;  %p4149_p2 = scmp.lt.s32.totalorder %s4143_s23, %s4143_s23 }
0x15db   :  { %2874 = vadd.xlane.f32.xlu0 %v2873_v55  ;;  %3905 = vmatprep.subr.bf16.mxu1 %v3904_v5 }
0x15dc   :  { %3907 = vmatpush3.bf16.msra.mxu1 %v3904_v5  ;;  %p4150_p3 = por %p4149_p2, %p4148_p1 }
0x15dd   :  { %3909 = vmatprep.subr.bf16.mxu1 %v3908_v8 }
0x15de   :  { %p4151_p4 = pnand %p4150_p3, %p4144_p0 }
0x15e0   :  { %3911 = vmatpush3.bf16.msra.mxu1 %v3908_v8 }
0x1667   :  { %v2878_v57 = vpop.xlane.xlu1 %2877 }
0x1668   :  { %v2880_v58 = vmul.f32 0.03125, %v2878_v57  ;;  %v2875_v59 = vpop.xlane.xlu0 %2874 }
0x1669   :  { %v2879_v45 = vmul.f32 0.03125, %v2875_v59 }
0x166a   :  { %v2882_v60 = vsub.f32 %v2872_v50, %v2880_v58 }
0x166b   :  { %v2881_v28 = vsub.f32 %v2871_v49, %v2879_v45 }
0x166c   :  { %v2884_v1 = vmul.f32 %v2882_v60, %v2882_v60 }
0x166d   :  { %v2883_v43 = vmul.f32 %v2881_v28, %v2881_v28 }
0x166e   :  { %v2888_v0 = vsel %vm45_vm0, %v2884_v1, 0.0 }
0x166f   :  { %v2885_v32 = vsel %vm45_vm0, %v2883_v43, 0.0 }
0x1670   :  { %2886 = vadd.xlane.f32.xlu0 %v2885_v32 }
0x1674   :  { %2889 = vadd.xlane.f32.xlu0 %v2888_v0 }
0x16fd   :  { %v2887_v13 = vpop.xlane.xlu0 %2886 }
0x16fe   :  { %v2891_v46 = vmul.f32 0.03125, %v2887_v13 }
0x1700   :  { %v2893_v9 = vadd.f32 1e-05, %v2891_v46 }
0x1701   :  { %v2890_v10 = vpop.xlane.xlu0 %2889 }
0x1702   :  { %4125 = vrsqrt.f32 %v2893_v9  ;;  %v2892_v14 = vmul.f32 0.03125, %v2890_v10 }
0x1704   :  { %v2894_v16 = vadd.f32 1e-05, %v2892_v14 }
0x1706   :  { %4127 = vrsqrt.f32 %v2894_v16 }
0x170c   :  { %v4126_v3 = vpop.eup %4125 }
0x170d   :  { %v2897_v17 = vmul.f32 %v4126_v3, %v2881_v28 }
0x170f   :  { %v2903_v19 = vmul.f32 %v2902_v2, %v2897_v17 }
0x1710   :  { %v4128_v15 = vpop.eup %4127 }
0x1711   :  { %v2898_v12 = vmul.f32 %v4128_v15, %v2882_v60  ;;  %v4696_v20 = vadd.f32 %v2908_v18, %v2903_v19 }
0x1713   :  { %v2904_v21 = vmul.f32 %v2902_v2, %v2898_v12  ;;  %3751 = vmatprep.mubr.msk.f32.mxu1 %vm45_vm0, %v4696_v20 }
0x1715   :  { %v4700_v22 = vadd.f32 %v2908_v18, %v2904_v21 }
0x1717   :  { %3752 = vmatmul.mubr.msk.f32.vlgmr.msra.gmra.mrb[22].mxu1 %vm45_vm0, %v4700_v22 }
0x17ea   :  { %v3753_v36 = vpop.f32.mrb[22].mxu1 }
0x17eb   :  { %v3002_v40 = vadd.f32 %v3753_v36, %v3387_v4  ;;  %v2996_v38 = vpop.f32.mrb[23].mxu1 }
0x17ec   :  { %v2997_v37 = vadd.f32 %v3387_v4, %v2996_v38 }
0x17ed   :  { %v3006_v39 = vmul.f32 0.70710677, %v3002_v40  ;;  %v3054_v33 = vmul.f32 0.5, %v3002_v40 }
0x17ee   :  { %v3005_v42 = vmul.f32 0.70710677, %v2997_v37  ;;  %v3053_v27 = vmul.f32 0.5, %v2997_v37 }
0x17ef   :  { %v3008_v44 = vand.u32 2147483647, %v3006_v39  ;;  %vm3048_vm7 = vcmp.ge.f32.partialorder %v3006_v39, 0.0 }
0x17f0   :  { %v3007_v47 = vand.u32 2147483647, %v3005_v42  ;;  %vm3047_vm8 = vcmp.ge.f32.partialorder %v3005_v42, 0.0 }
0x17f1   :  { %v3010_v48 = vmul.f32 0.3275911, %v3008_v44  ;;  %v3036_v54 = vsub.f32 0.0, %v3008_v44 }
0x17f2   :  { %v3009_v52 = vmul.f32 0.3275911, %v3007_v47  ;;  %v3035_v55 = vsub.f32 0.0, %v3007_v47 }
0x17f3   :  { %v3012_v50 = vadd.f32 1.0, %v3010_v48  ;;  %v3038_v58 = vmul.f32 %v3036_v54, %v3008_v44 }
0x17f4   :  { %v3011_v49 = vadd.f32 1.0, %v3009_v52  ;;  %v3037_v60 = vmul.f32 %v3035_v55, %v3007_v47 }
0x17f5   :  { %4129 = vrcp.f32 %v3012_v50  ;;  %v3041_v32 = vmul.f32 1.442695, %v3038_v58 }
0x17f6   :  { %4131 = vrcp.f32 %v3011_v49  ;;  %v3039_v61 = vmul.f32 1.442695, %v3037_v60  ;;  %v3201_v60 = vld [vmem:[%s4786_s10 + $0x18] sm:$0xff] }
0x17f7   :  { %4133 = vpow2.f32 %v3041_v32 }
0x17f8   :  { %4135 = vpow2.f32 %v3039_v61 }
0x17ff   :  { %v4130_v57 = vpop.eup %4129 }
0x1800   :  { %v4132_v59 = vpop.eup %4131  ;;  %v3018_v45 = vmul.f32 1.0614054, %v4130_v57 }
0x1801   :  { %v3017_v28 = vmul.f32 1.0614054, %v4132_v59  ;;  %v4134_v3 = vpop.eup %4133 }
0x1802   :  { %v3020_v43 = vadd.f32 -1.4531521, %v3018_v45  ;;  %v4136_v18 = vpop.eup %4135  ;;  %v3200_v45 = vld [vmem:[%s4786_s10 + $0x10] sm:$0xff] }
0x1803   :  { %v3019_v1 = vadd.f32 -1.4531521, %v3017_v28  ;;  %v3932_v28 = vpack.c.bf16 %v3201_v60, %v3200_v45 }
0x1804   :  { %v3022_v0 = vmul.f32 %v4130_v57, %v3020_v43  ;;  %v4180_v43 = vmov 0.0  }
0x1805   :  { %v3021_v31 = vmul.f32 %v4132_v59, %v3019_v1  ;;  %3781 = vmatprep.mubr.msk.f32.mxu1 %vm4179_vm9, %v4180_v43 }
0x1806   :  { %v3024_v5 = vadd.f32 1.4214138, %v3022_v0 }
0x1807   :  { %v3023_v6 = vadd.f32 1.4214138, %v3021_v31 }
0x1808   :  { %v3026_v7 = vmul.f32 %v4130_v57, %v3024_v5 }
0x1809   :  { %v3025_v8 = vmul.f32 %v4132_v59, %v3023_v6  ;;  %v3184_v6 = vrot.slane %v4669_v41, %v1628_v51  ;;  %v3400_v51 = vld [vmem:[%s4787_s11] ss:$0 sm:$0xff] }
0x180a   :  { %v3028_v13 = vadd.f32 -0.28449672, %v3026_v7 }
0x180b   :  { %v3027_v46 = vadd.f32 -0.28449672, %v3025_v8 }
0x180c   :  { %v3030_v9 = vmul.f32 %v4130_v57, %v3028_v13  ;;  %v3190_v13 = vrot.slane %v4669_v41, %v1634_v53 }
0x180d   :  { %v3029_v10 = vmul.f32 %v4132_v59, %v3027_v46 }
0x180e   :  { %v3032_v14 = vadd.f32 0.2548296, %v3030_v9 }
0x180f   :  { %v3031_v16 = vadd.f32 0.2548296, %v3029_v10 }
0x1810   :  { %v3034_v2 = vmul.f32 %v4130_v57, %v3032_v14  ;;  %v3199_v57 = vld [vmem:[%s4786_s10 + $0x8] sm:$0xff] }
0x1811   :  { %v3033_v17 = vmul.f32 %v4132_v59, %v3031_v16  ;;  %v4178_v59 = vmov 0.0|0.0  }
0x1812   :  { %v3044_v19 = vmul.f32 %v4134_v3, %v3034_v2  ;;  %3928 = vmatprep.subr.bf16.mxu1 %v4178_v59 }
0x1813   :  { %v3043_v15 = vmul.f32 %v4136_v18, %v3033_v17 }
0x1814   :  { %v3046_v12 = vsub.f32 1.0, %v3044_v19 }
0x1815   :  { %v3045_v21 = vsub.f32 1.0, %v3043_v15 }
0x1816   :  { %v3050_v30 = vsub.f32 0.0, %v3046_v12 }
0x1817   :  { %v3049_v56 = vsub.f32 0.0, %v3045_v21 }
0x1818   :  { %v3052_v23 = vsel %vm3048_vm7, %v3046_v12, %v3050_v30 }
0x1819   :  { %v3056_v24 = vadd.f32 1.0, %v3052_v23  ;;  %v3051_v25 = vsel %vm3047_vm8, %v3045_v21, %v3049_v56 }
0x181a   :  { %v3055_v29 = vadd.f32 1.0, %v3051_v25 }
0x181b   :  { %v3058_v35 = vmul.f32 %v3056_v24, %v3054_v33 }
0x181c   :  { %v3057_v34 = vmul.f32 %v3055_v29, %v3053_v27 }
0x181e   :  { %3770 = vmatprep.mubr.msk.f32.mxu0 %vm1516_vm6, %v3057_v34 }
0x181f   :  { %3771 = vmatmul.mubr.msk.f32.vlgmr.msra.gmra.mrb[22].mxu0 %vm1516_vm6, %v3058_v35 }
0x18f2   :  { %v3772_v63 = vpop.f32.mrb[22].mxu0 }
0x18f3   :  { %v3150_v4 = vadd.f32 %v3772_v63, %v3071_v62  ;;  %v3144_v36 = vpop.f32.mrb[23].mxu0 }
0x18f4   :  { %v3145_v38 = vadd.f32 %v3144_v36, %v3071_v62 }
0x18f5   :  { %v3154_v39 = vadd.f32 %v3150_v4, %v4700_v22 }
0x18f6   :  { %v3153_v40 = vadd.f32 %v3145_v38, %v4696_v20  ;;  %v3198_v20 = vld [vmem:[%s4786_s10] sm:$0xff] }
0x18f7   :  { %v3158_v37 = vsel %vm45_vm0, %v3154_v39, 0.0  ;;  %v3929_v58 = vpack.c.bf16 %v3199_v57, %v3198_v20 }
0x18f8   :  { %3159 = vadd.xlane.f32.xlu0 %v3158_v37  ;;  %v3155_v42 = vsel %vm45_vm0, %v3153_v40, 0.0 }
0x18f9   :  { %3930 = vmatpush3.bf16.msra.mxu1 %v3929_v58 }
0x18fa   :  { %3931 = vmatprep.subr.bf16.mxu1 %v4178_v59 }
0x18fc   :  { %3156 = vadd.xlane.f32.xlu0 %v3155_v42 }
0x18fd   :  { %3933 = vmatpush3.bf16.msra.mxu1 %v3932_v28 }
0x1985   :  { %v3160_v44 = vpop.xlane.xlu0 %3159 }
0x1986   :  { %v3162_v47 = vmul.f32 0.03125, %v3160_v44 }
0x1988   :  { %v3164_v48 = vsub.f32 %v3154_v39, %v3162_v47 }
0x1989   :  { %v3157_v52 = vpop.xlane.xlu0 %3156 }
0x198a   :  { %v3161_v50 = vmul.f32 0.03125, %v3157_v52  ;;  %v3166_v11 = vmul.f32 %v3164_v48, %v3164_v48 }
0x198c   :  { %v3163_v49 = vsub.f32 %v3153_v40, %v3161_v50  ;;  %v3170_v54 = vsel %vm45_vm0, %v3166_v11, 0.0 }
0x198d   :  { %3171 = vadd.xlane.f32.xlu0 %v3170_v54 }
0x198e   :  { %v3165_v55 = vmul.f32 %v3163_v49, %v3163_v49 }
0x1990   :  { %v3167_v22 = vsel %vm45_vm0, %v3165_v55, 0.0 }
0x1991   :  { %3168 = vadd.xlane.f32.xlu1 %v3167_v22 }
0x1a1a   :  { %v3172_v32 = vpop.xlane.xlu0 %3171 }
0x1a1b   :  { %v3174_v1 = vmul.f32 0.03125, %v3172_v32 }
0x1a1d   :  { %v3176_v0 = vadd.f32 1e-05, %v3174_v1 }
0x1a1e   :  { %v3169_v61 = vpop.xlane.xlu1 %3168 }
0x1a1f   :  { %4137 = vrsqrt.f32 %v3176_v0  ;;  %v3173_v31 = vmul.f32 0.03125, %v3169_v61 }
0x1a21   :  { %v3175_v5 = vadd.f32 1e-05, %v3173_v31 }
0x1a23   :  { %4139 = vrsqrt.f32 %v3175_v5 }
0x1a29   :  { %v4138_v7 = vpop.eup %4137 }
0x1a2a   :  { %v3180_v8 = vmul.f32 %v4138_v7, %v3164_v48 }
0x1a2c   :  { %v3186_v46 = vmul.f32 %v3184_v6, %v3180_v8 }
0x1a2d   :  { %v4140_v9 = vpop.eup %4139 }
0x1a2e   :  { %v3179_v10 = vmul.f32 %v4140_v9, %v3163_v49  ;;  %v3192_v14 = vadd.f32 %v3190_v13, %v3186_v46 }
0x1a30   :  { %v3185_v16 = vmul.f32 %v3184_v6, %v3179_v10  ;;  %v3194_v3 = vrot.slane %v3192_v14, 7 }
0x1a32   :  { %v3191_v2 = vadd.f32 %v3190_v13, %v3185_v16 }
0x1a34   :  { %v3197_v17 = vsel %vm3196_vm10, %v3191_v2, %v3194_v3 }
0x1a35   :  { %3782 = vmatmul.mubr.msk.f32.vlgmr.msra.gmra.mrb[24].mxu1 %vm45_vm0, %v3197_v17 }
0x1b08   :  { %v3278_v26 = vpop.f32.mrb[24].mxu1 }
0x1b09   :  { %v3279_v18 = vadd.f32 %v3400_v51, %v3278_v26  ;;  %v3783_v53 = vpop.f32.mrb[25].mxu1 }
0x1b0b   :  { %3282 = vst [vmem:[#allocation2] sm:$0x3] %v3279_v18 }
0x1b0c   :  { %4154 = shalt.err (!%p4151_p4)
}
0x1b0d   :  { %s4155_s4 = scalar_lea.hbm %s4788_s12, 32 }
0x1b0e   :  { %p4156_p5 = scmp.ne.s32.totalorder %s4788_s12, %s4155_s4  ;;  %p4159_p6 = scmp.lt.u32.totalorder %s4155_s4, %s4788_s12 }
0x1b10   :  { %p4161_p7 = pnand %p4159_p6, %p4156_p5 }
0x1b12   :  { %4164 = shalt.err (!%p4161_p7)
}
0x1b13   :  { %3292 = dma.vmem_to_hbm [thread:$0]  %s3290_s7, 32, %s4788_s12, [#allocation3]  }
0x1b14   :  { %4165 = dma.done.wait [#allocation3], 32  }
0x1b15   :  { %4166 = vsyncadd [#allocation3], 4294967264 }
0x1b16   :  { %3296 = vsyncpa [#allocation3], 1 }

</bundles_post_ra>
